<compile_context>
chip_gen: v5e
topology: v5e:2x2
jax: 0.10.0
libtpu: 0.0.40
codegen_flags: <defaults>
</compile_context>

<pallas_src>
import numpy as np
import jax
import jax.numpy as jnp
from jax import lax
from jax.experimental import pallas as pl
from jax.experimental.pallas import tpu as pltpu

# ---------------- config (small, deterministic) ----------------
B        = 2      # batch
S        = 8      # n_enc_seq
D_HIDDEN = 32
N_HEAD   = 4
D_HEAD   = 8      # n_head * d_head == d_hidden
NH_DH    = N_HEAD * D_HEAD
D_FF     = 64
N_LAYER  = 2
N_VOCAB  = 16
I_PAD    = 0
EPS      = 1e-6   # layer_norm_epsilon
NEG_INF  = -1.0e9
BS       = B * S  # folded row count


# ---------------- math helpers usable inside the kernel ----------------
def _erf(x):
    # Abramowitz & Stegun 7.1.26 rational approximation (|err| < 1.5e-7);
    # only exp/mul/add/select -> lowers cleanly on VPU/EUP.
    a1, a2, a3, a4, a5 = 0.254829592, -0.284496736, 1.421413741, -1.453152027, 1.061405429
    p = 0.3275911
    sign = jnp.where(x >= 0.0, 1.0, -1.0)
    ax = jnp.abs(x)
    t = 1.0 / (1.0 + p * ax)
    poly = ((((a5 * t + a4) * t + a3) * t + a2) * t + a1) * t
    return sign * (1.0 - poly * jnp.exp(-ax * ax))


def _gelu_exact(x):
    # matches torch.nn.GELU() (erf form)
    return 0.5 * x * (1.0 + _erf(x * 0.7071067811865476))


def _layer_norm(x, gamma, beta):
    mu = jnp.mean(x, axis=-1, keepdims=True)
    var = jnp.mean((x - mu) * (x - mu), axis=-1, keepdims=True)
    return (x - mu) * lax.rsqrt(var + EPS) * gamma + beta


# ---------------- fused Pallas kernel: ALL encoder layers ----------------
def encoder_kernel(x0_ref, bias_ref,
                   wqkv_ref, bqkv_ref, wo_ref, bo_ref, g1_ref, be1_ref,
                   w1_ref, cb1_ref, w2_ref, cb2_ref, g2_ref, be2_ref,
                   out_ref, ln1_ref):
    layer = pl.program_id(0)

    # Layer 0: seed the resident output block (persistent activations) with
    # the embeddings.  out_ref has a constant index_map -> stays in VMEM for
    # the whole grid and doubles as the inter-layer activation buffer.
    @pl.when(layer == 0)
    def _():
        out_ref[...] = x0_ref[...]

    x = out_ref[...]                    # (B*S, H) f32, resident across layers
    bias = bias_ref[...]                # (B*S, B*S) additive mask: 0 or -1e9

    # Per-layer weights: fully VMEM-resident stacks, dynamic index on layer axis.
    wqkv = wqkv_ref[layer]              # (H, 3*NH_DH)  bf16
    bqkv = bqkv_ref[layer]              # (1, 3*NH_DH)  f32
    wo   = wo_ref[layer]                # (NH_DH, H)    bf16
    bo   = bo_ref[layer]                # (1, H)        f32
    g1, be1 = g1_ref[layer], be1_ref[layer]
    w1, cb1 = w1_ref[layer], cb1_ref[layer]   # (H, D_FF) bf16, (1, D_FF) f32
    w2, cb2 = w2_ref[layer], cb2_ref[layer]   # (D_FF, H) bf16, (1, H)    f32
    g2, be2 = g2_ref[layer], be2_ref[layer]

    # ---- fused QKV projection: one MXU pass, bf16 operands, f32 accumulate ----
    x_bf = x.astype(jnp.bfloat16)
    qkv = jnp.dot(x_bf, wqkv, preferred_element_type=jnp.float32) + bqkv  # (B*S, 3*NH_DH)

    scale = 1.0 / (D_HEAD ** 0.5)
    attn_out = None
    for h in range(N_HEAD):             # static, small head count
        lo = h * D_HEAD
        qh = qkv[:, lo:lo + D_HEAD].astype(jnp.bfloat16)
        kh = qkv[:, NH_DH + lo:NH_DH + lo + D_HEAD].astype(jnp.bfloat16)
        vh = qkv[:, 2 * NH_DH + lo:2 * NH_DH + lo + D_HEAD].astype(jnp.bfloat16)
        # Q.K^T via dot_general contracting dim 1 of both (no explicit .T).
        s = lax.dot_general(qh, kh, (((1,), (1,)), ((), ())),
                            preferred_element_type=jnp.float32) * scale
        s = s + bias                    # pad-key + cross-batch masking (f32, exact)
        m = jnp.max(s, axis=-1, keepdims=True)
        e = jnp.exp(s - m)
        p = e / jnp.sum(e, axis=-1, keepdims=True)   # exact normalization
        ctx = jnp.dot(p.astype(jnp.bfloat16), vh,
                      preferred_element_type=jnp.float32)          # (B*S, d_head)
        # Accumulate through the head's 8-row slice of W_O (tile-aligned slice,
        # no concatenate / lane shifts).
        part = jnp.dot(ctx.astype(jnp.bfloat16), wo[lo:lo + D_HEAD, :],
                       preferred_element_type=jnp.float32)
        attn_out = part if attn_out is None else attn_out + part
    attn_out = attn_out + bo

    # ---- residual + LayerNorm1 (f32) ----
    ln1 = _layer_norm(x + attn_out, g1, be1)          # (B*S, H)
    # Reference Encoderlayer returns this tensor as its second output.
    ln1_ref[0] = ln1

    # ---- position-wise FFN (Conv1d k=1 == dense), exact GELU ----
    h1 = _gelu_exact(jnp.dot(ln1.astype(jnp.bfloat16), w1,
                             preferred_element_type=jnp.float32) + cb1)
    h2 = jnp.dot(h1.astype(jnp.bfloat16), w2,
                 preferred_element_type=jnp.float32) + cb2

    # ---- residual + LayerNorm2 -> becomes next layer's input (resident) ----
    out_ref[...] = _layer_norm(h2 + ln1, g2, be2)


def encoder_pallas(x0, bias, packed):
    """x0: (B*S, H) f32, bias: (B*S, B*S) f32, packed: 12 stacked (L, ...) arrays."""
    L = packed[0].shape[0]

    def resident(a):
        nd = a.ndim
        return pl.BlockSpec(a.shape, lambda l, _nd=nd: (0,) * _nd)

    in_specs = [resident(x0), resident(bias)] + [resident(p) for p in packed]
    out_specs = (
        pl.BlockSpec((BS, D_HIDDEN), lambda l: (0, 0)),         # resident activations
        pl.BlockSpec((1, BS, D_HIDDEN), lambda l: (l, 0, 0)),   # per-layer LN1 outputs
    )
    out_shape = (
        jax.ShapeDtypeStruct((BS, D_HIDDEN), jnp.float32),
        jax.ShapeDtypeStruct((L, BS, D_HIDDEN), jnp.float32),
    )

    grid_spec = pltpu.PrefetchScalarGridSpec(
        num_scalar_prefetch=0,
        grid=(L,),                      # layer loop lives inside ONE pallas_call
        in_specs=in_specs,
        out_specs=out_specs,
    )
    return pl.pallas_call(
        encoder_kernel,
        out_shape=out_shape,
        grid_spec=grid_spec,
        compiler_params=pltpu.CompilerParams(dimension_semantics=("arbitrary",)),
    )(x0, bias, *packed)


# ---------------- plain-JAX glue: embeddings, mask, parameter packing ----------------
def get_sinusoid_encoding_table(n_seq, d_hidden):
    pos = np.arange(n_seq)[:, None].astype(np.float64)
    i = np.arange(d_hidden)[None, :]
    angle = pos / np.power(10000, 2 * (i // 2) / d_hidden)
    table = np.zeros((n_seq, d_hidden))
    table[:, 0::2] = np.sin(angle[:, 0::2])
    table[:, 1::2] = np.cos(angle[:, 1::2])
    return table


def pack_layer_params(layer_params):
    """Stack per-layer params over the layer axis; fuse QKV; cast matmul weights to bf16."""
    def st(i):
        return jnp.stack([lp[i] for lp in layer_params])
    wq, bq, wk, bk, wv, bv = st(0), st(1), st(2), st(3), st(4), st(5)
    wo, bo, g1, be1 = st(6), st(7), st(8), st(9)
    w1, cb1, w2, cb2, g2, be2 = st(10), st(11), st(12), st(13), st(14), st(15)
    wqkv = jnp.concatenate([wq, wk, wv], axis=-1).astype(jnp.bfloat16)  # (L, H, 3*NH_DH)
    bqkv = jnp.concatenate([bq, bk, bv], axis=-1).astype(jnp.float32)   # (L, 1, 3*NH_DH)
    return (wqkv, bqkv, wo.astype(jnp.bfloat16), bo, g1, be1,
            w1.astype(jnp.bfloat16), cb1, w2.astype(jnp.bfloat16), cb2, g2, be2)


def encoder_forward(input_ids, emb_table, pos_table, layer_params):
    Bn, Sn = input_ids.shape
    positions = jnp.broadcast_to(jnp.arange(Sn, dtype=input_ids.dtype) + 1, (Bn, Sn))
    positions = jnp.where(input_ids == I_PAD, 0, positions)
    x0 = (emb_table[input_ids] + pos_table[positions]).astype(jnp.float32)   # (B,S,H)
    x0 = x0.reshape(Bn * Sn, D_HIDDEN)   # fold batch into rows (wrapper-side, free in XLA)

    # Additive attention bias over the folded (B*S) row/key axes:
    # -1e9 where the key is a pad token OR belongs to another batch element.
    # TODO(synk): at realistic B*S build this in-kernel from O(B*S) scalars
    # instead of materializing the quadratic matrix.
    key_pad = (input_ids == I_PAD).reshape(Bn * Sn)
    batch_id = jnp.repeat(jnp.arange(Bn), Sn)
    masked = (batch_id[:, None] != batch_id[None, :]) | key_pad[None, :]
    bias = jnp.where(masked, NEG_INF, 0.0).astype(jnp.float32)               # (B*S, B*S)

    packed = pack_layer_params(layer_params)
    out2d, ln1_stack = encoder_pallas(x0, bias, packed)

    outputs = out2d.reshape(Bn, Sn, D_HIDDEN)
    # Matches the PyTorch reference exactly: Encoderlayer returns attn_outputs
    # (the LayerNorm1 output), so Encoder's attn_probs list holds those tensors.
    attn_probs = [ln1_stack[l].reshape(Bn, Sn, D_HIDDEN) for l in range(len(layer_params))]
    return outputs, attn_probs


def init_layer_params(key):
    ks = jax.random.split(key, 12)

    def lin(kw, kb, din, dout):
        w = jax.random.normal(kw, (din, dout), jnp.float32) * (1.0 / np.sqrt(din))
        b = jax.random.normal(kb, (1, dout), jnp.float32) * 0.01
        return w, b

    wq, bq = lin(ks[0], ks[1], D_HIDDEN, NH_DH)
    wk, bk = lin(ks[2], ks[3], D_HIDDEN, NH_DH)
    wv, bv = lin(ks[4], ks[5], D_HIDDEN, NH_DH)
    wo, bo = lin(ks[6], ks[7], NH_DH, D_HIDDEN)
    g1 = jnp.ones((1, D_HIDDEN), jnp.float32)
    be1 = jnp.zeros((1, D_HIDDEN), jnp.float32)
    w1, cb1 = lin(ks[8], ks[9], D_HIDDEN, D_FF)     # conv1 (k=1) as dense
    w2, cb2 = lin(ks[10], ks[11], D_FF, D_HIDDEN)   # conv2 (k=1) as dense
    g2 = jnp.ones((1, D_HIDDEN), jnp.float32)
    be2 = jnp.zeros((1, D_HIDDEN), jnp.float32)
    return (wq, bq, wk, bk, wv, bv, wo, bo, g1, be1, w1, cb1, w2, cb2, g2, be2)


# ---------------- pure-JAX f32 reference (in-script sanity check) ----------------
def encoder_ref(input_ids, emb_table, pos_table, layer_params):
    Bn, Sn = input_ids.shape
    positions = jnp.where(input_ids == I_PAD, 0, jnp.arange(Sn, dtype=input_ids.dtype) + 1)
    x = (emb_table[input_ids] + pos_table[positions]).astype(jnp.float32)
    key_pad = (input_ids == I_PAD)[:, None, None, :]                       # (B,1,1,S)

    def ln(z, g, b):
        mu = z.mean(-1, keepdims=True)
        var = ((z - mu) ** 2).mean(-1, keepdims=True)
        return (z - mu) / jnp.sqrt(var + EPS) * g + b

    ln1_outs = []
    for (wq, bq, wk, bk, wv, bv, wo, bo, g1, be1, w1, cb1, w2, cb2, g2, be2) in layer_params:
        q = (x @ wq + bq).reshape(Bn, Sn, N_HEAD, D_HEAD).transpose(0, 2, 1, 3)
        k = (x @ wk + bk).reshape(Bn, Sn, N_HEAD, D_HEAD).transpose(0, 2, 1, 3)
        v = (x @ wv + bv).reshape(Bn, Sn, N_HEAD, D_HEAD).transpose(0, 2, 1, 3)
        s = jnp.einsum('bhqd,bhkd->bhqk', q, k) / (D_HEAD ** 0.5)
        s = jnp.where(key_pad, NEG_INF, s)
        p = jax.nn.softmax(s, axis=-1)
        ctx = jnp.einsum('bhqk,bhkd->bhqd', p, v).transpose(0, 2, 1, 3).reshape(Bn, Sn, NH_DH)
        attn = ctx @ wo + bo
        ln1 = ln(x + attn, g1, be1)
        h = jax.nn.gelu(ln1 @ w1 + cb1, approximate=False)
        x = ln((h @ w2 + cb2) + ln1, g2, be2)
        ln1_outs.append(ln1)
    return x, ln1_outs


if __name__ == "__main__":
    key = jax.random.PRNGKey(0)
    k_emb, k_ids, *k_layers = jax.random.split(key, 2 + N_LAYER)

    emb_table = jax.random.normal(k_emb, (N_VOCAB, D_HIDDEN), jnp.float32) * 0.1
    pos_table = jnp.asarray(get_sinusoid_encoding_table(S + 1, D_HIDDEN), jnp.float32)

    input_ids = jax.random.randint(k_ids, (B, S), 1, N_VOCAB, dtype=jnp.int32)
    input_ids = input_ids.at[0, S - 2:].set(I_PAD)   # introduce some padding tokens

    layer_params = [init_layer_params(k) for k in k_layers]

    outputs, attn_probs = encoder_forward(input_ids, emb_table, pos_table, layer_params)
    jax.block_until_ready((outputs, attn_probs))

    assert outputs.shape == (B, S, D_HIDDEN)
    assert len(attn_probs) == N_LAYER and attn_probs[0].shape == (B, S, D_HIDDEN)
    assert bool(jnp.all(jnp.isfinite(outputs)))

    # Sanity check vs. an f32 pure-JAX reference.  Tolerance accounts for bf16
    # MXU operands (rel ~4e-3 per matmul, accumulated over 2 layers) and the
    # erf polynomial (|err| < 1.5e-7); softmax/LayerNorm are exact f32.
    ref_out, ref_ln1 = encoder_ref(input_ids, emb_table, pos_table, layer_params)
    assert float(jnp.max(jnp.abs(outputs - ref_out))) < 5e-2
    assert float(jnp.max(jnp.abs(attn_probs[-1] - ref_ln1[-1]))) < 5e-2

    print("KERNEL_OK")
</pallas_src>

<mosaic_0001>
module attributes {stable_mosaic.version = 11 : i64} {
  func.func @encoder_kernel(%arg0: i32, %arg1: memref<16x32xf32, #tpu.memory_space<vmem>>, %arg2: memref<16x16xf32, #tpu.memory_space<vmem>>, %arg3: memref<2x32x96xbf16, #tpu.memory_space<vmem>>, %arg4: memref<2x1x96xf32, #tpu.memory_space<vmem>>, %arg5: memref<2x32x32xbf16, #tpu.memory_space<vmem>>, %arg6: memref<2x1x32xf32, #tpu.memory_space<vmem>>, %arg7: memref<2x1x32xf32, #tpu.memory_space<vmem>>, %arg8: memref<2x1x32xf32, #tpu.memory_space<vmem>>, %arg9: memref<2x32x64xbf16, #tpu.memory_space<vmem>>, %arg10: memref<2x1x64xf32, #tpu.memory_space<vmem>>, %arg11: memref<2x64x32xbf16, #tpu.memory_space<vmem>>, %arg12: memref<2x1x32xf32, #tpu.memory_space<vmem>>, %arg13: memref<2x1x32xf32, #tpu.memory_space<vmem>>, %arg14: memref<2x1x32xf32, #tpu.memory_space<vmem>>, %arg15: memref<16x32xf32, #tpu.memory_space<vmem>>, %arg16: memref<1x16x32xf32, #tpu.memory_space<vmem>>) attributes {dimension_semantics = [#tpu.dimension_semantics<arbitrary>], iteration_bounds = array<i64: 2>, scalar_prefetch = 0 : i64, scratch_operands = 0 : i64, tpu.core_type = #tpu.core_type<tc>, window_params = [{pipeline_mode = #tpu.pipeline_mode<synchronous>, transform_indices = @transform_0, window_bounds = array<i64: 16, 32>}, {pipeline_mode = #tpu.pipeline_mode<synchronous>, transform_indices = @transform_1, window_bounds = array<i64: 16, 16>}, {pipeline_mode = #tpu.pipeline_mode<synchronous>, transform_indices = @transform_2, window_bounds = array<i64: 2, 32, 96>}, {pipeline_mode = #tpu.pipeline_mode<synchronous>, transform_indices = @transform_3, window_bounds = array<i64: 2, 1, 96>}, {pipeline_mode = #tpu.pipeline_mode<synchronous>, transform_indices = @transform_4, window_bounds = array<i64: 2, 32, 32>}, {pipeline_mode = #tpu.pipeline_mode<synchronous>, transform_indices = @transform_5, window_bounds = array<i64: 2, 1, 32>}, {pipeline_mode = #tpu.pipeline_mode<synchronous>, transform_indices = @transform_6, window_bounds = array<i64: 2, 1, 32>}, {pipeline_mode = #tpu.pipeline_mode<synchronous>, transform_indices = @transform_7, window_bounds = array<i64: 2, 1, 32>}, {pipeline_mode = #tpu.pipeline_mode<synchronous>, transform_indices = @transform_8, window_bounds = array<i64: 2, 32, 64>}, {pipeline_mode = #tpu.pipeline_mode<synchronous>, transform_indices = @transform_9, window_bounds = array<i64: 2, 1, 64>}, {pipeline_mode = #tpu.pipeline_mode<synchronous>, transform_indices = @transform_10, window_bounds = array<i64: 2, 64, 32>}, {pipeline_mode = #tpu.pipeline_mode<synchronous>, transform_indices = @transform_11, window_bounds = array<i64: 2, 1, 32>}, {pipeline_mode = #tpu.pipeline_mode<synchronous>, transform_indices = @transform_12, window_bounds = array<i64: 2, 1, 32>}, {pipeline_mode = #tpu.pipeline_mode<synchronous>, transform_indices = @transform_13, window_bounds = array<i64: 2, 1, 32>}, {pipeline_mode = #tpu.pipeline_mode<synchronous>, transform_indices = @transform_14, window_bounds = array<i64: 16, 32>}, {transform_indices = @transform_15, window_bounds = array<i64: 1, 16, 32>}]} {
    %c0_i32 = arith.constant 0 : i32
    %0 = arith.cmpi eq, %arg0, %c0_i32 : i32
    %1 = arith.extui %0 : i1 to i32
    %c0_i32_0 = arith.constant 0 : i32
    %2 = arith.cmpi ne, %1, %c0_i32_0 : i32
    scf.if %2 {
      %c0_85 = arith.constant 0 : index
      %c0_86 = arith.constant 0 : index
      %249 = vector.load %arg1[%c0_85, %c0_86] : memref<16x32xf32, #tpu.memory_space<vmem>>, vector<16x32xf32>
      %c0_87 = arith.constant 0 : index
      %c0_88 = arith.constant 0 : index
      %250 = vector.load %arg15[%c0_87, %c0_88] : memref<16x32xf32, #tpu.memory_space<vmem>>, vector<16x32xf32>
      tpu.vector_store %arg15[%c0_87, %c0_88], %249 {strides = array<i32>} : memref<16x32xf32, #tpu.memory_space<vmem>>, vector<16x32xf32>,
    } else {
    }
    %c0 = arith.constant 0 : index
    %c0_1 = arith.constant 0 : index
    %3 = vector.load %arg15[%c0, %c0_1] : memref<16x32xf32, #tpu.memory_space<vmem>>, vector<16x32xf32>
    %c0_2 = arith.constant 0 : index
    %c0_3 = arith.constant 0 : index
    %4 = vector.load %arg2[%c0_2, %c0_3] : memref<16x16xf32, #tpu.memory_space<vmem>>, vector<16x16xf32>
    %5 = arith.index_cast %arg0 : i32 to index
    %c0_4 = arith.constant 0 : index
    %c0_5 = arith.constant 0 : index
    %6 = vector.load %arg3[%5, %c0_4, %c0_5] : memref<2x32x96xbf16, #tpu.memory_space<vmem>>, vector<1x32x96xbf16>
    %7 = vector.shape_cast %6 : vector<1x32x96xbf16> to vector<32x96xbf16>
    %8 = arith.index_cast %arg0 : i32 to index
    %c0_6 = arith.constant 0 : index
    %c0_7 = arith.constant 0 : index
    %9 = vector.load %arg4[%8, %c0_6, %c0_7] : memref<2x1x96xf32, #tpu.memory_space<vmem>>, vector<1x1x96xf32>
    %10 = vector.shape_cast %9 : vector<1x1x96xf32> to vector<1x96xf32>
    %11 = arith.index_cast %arg0 : i32 to index
    %c0_8 = arith.constant 0 : index
    %c0_9 = arith.constant 0 : index
    %12 = vector.load %arg5[%11, %c0_8, %c0_9] : memref<2x32x32xbf16, #tpu.memory_space<vmem>>, vector<1x32x32xbf16>
    %13 = vector.shape_cast %12 : vector<1x32x32xbf16> to vector<32x32xbf16>
    %14 = arith.index_cast %arg0 : i32 to index
    %c0_10 = arith.constant 0 : index
    %c0_11 = arith.constant 0 : index
    %15 = vector.load %arg6[%14, %c0_10, %c0_11] : memref<2x1x32xf32, #tpu.memory_space<vmem>>, vector<1x1x32xf32>
    %16 = vector.shape_cast %15 : vector<1x1x32xf32> to vector<1x32xf32>
    %17 = arith.index_cast %arg0 : i32 to index
    %c0_12 = arith.constant 0 : index
    %c0_13 = arith.constant 0 : index
    %18 = vector.load %arg7[%17, %c0_12, %c0_13] : memref<2x1x32xf32, #tpu.memory_space<vmem>>, vector<1x1x32xf32>
    %19 = vector.shape_cast %18 : vector<1x1x32xf32> to vector<1x32xf32>
    %20 = arith.index_cast %arg0 : i32 to index
    %c0_14 = arith.constant 0 : index
    %c0_15 = arith.constant 0 : index
    %21 = vector.load %arg8[%20, %c0_14, %c0_15] : memref<2x1x32xf32, #tpu.memory_space<vmem>>, vector<1x1x32xf32>
    %22 = vector.shape_cast %21 : vector<1x1x32xf32> to vector<1x32xf32>
    %23 = arith.index_cast %arg0 : i32 to index
    %c0_16 = arith.constant 0 : index
    %c0_17 = arith.constant 0 : index
    %24 = vector.load %arg9[%23, %c0_16, %c0_17] : memref<2x32x64xbf16, #tpu.memory_space<vmem>>, vector<1x32x64xbf16>
    %25 = vector.shape_cast %24 : vector<1x32x64xbf16> to vector<32x64xbf16>
    %26 = arith.index_cast %arg0 : i32 to index
    %c0_18 = arith.constant 0 : index
    %c0_19 = arith.constant 0 : index
    %27 = vector.load %arg10[%26, %c0_18, %c0_19] : memref<2x1x64xf32, #tpu.memory_space<vmem>>, vector<1x1x64xf32>
    %28 = vector.shape_cast %27 : vector<1x1x64xf32> to vector<1x64xf32>
    %29 = arith.index_cast %arg0 : i32 to index
    %c0_20 = arith.constant 0 : index
    %c0_21 = arith.constant 0 : index
    %30 = vector.load %arg11[%29, %c0_20, %c0_21] : memref<2x64x32xbf16, #tpu.memory_space<vmem>>, vector<1x64x32xbf16>
    %31 = vector.shape_cast %30 : vector<1x64x32xbf16> to vector<64x32xbf16>
    %32 = arith.index_cast %arg0 : i32 to index
    %c0_22 = arith.constant 0 : index
    %c0_23 = arith.constant 0 : index
    %33 = vector.load %arg12[%32, %c0_22, %c0_23] : memref<2x1x32xf32, #tpu.memory_space<vmem>>, vector<1x1x32xf32>
    %34 = vector.shape_cast %33 : vector<1x1x32xf32> to vector<1x32xf32>
    %35 = arith.index_cast %arg0 : i32 to index
    %c0_24 = arith.constant 0 : index
    %c0_25 = arith.constant 0 : index
    %36 = vector.load %arg13[%35, %c0_24, %c0_25] : memref<2x1x32xf32, #tpu.memory_space<vmem>>, vector<1x1x32xf32>
    %37 = vector.shape_cast %36 : vector<1x1x32xf32> to vector<1x32xf32>
    %38 = arith.index_cast %arg0 : i32 to index
    %c0_26 = arith.constant 0 : index
    %c0_27 = arith.constant 0 : index
    %39 = vector.load %arg14[%38, %c0_26, %c0_27] : memref<2x1x32xf32, #tpu.memory_space<vmem>>, vector<1x1x32xf32>
    %40 = vector.shape_cast %39 : vector<1x1x32xf32> to vector<1x32xf32>
    %41 = arith.truncf %3 : vector<16x32xf32> to vector<16x32xbf16>
    %cst = arith.constant dense<0.000000e+00> : vector<16x96xf32>
    %42 = tpu.matmul %41, %7, %cst {dimension_numbers = #tpu.dot_dimension_numbers<[1], [0], [0], [1], [0, 0, 1, 1], [], []>} : vector<16x32xbf16>, vector<32x96xbf16>, vector<16x96xf32> -> vector<16x96xf32>
    %43 = vector.broadcast %10 : vector<1x96xf32> to vector<16x96xf32>
    %44 = arith.addf %42, %43 : vector<16x96xf32>
    %45 = vector.extract_strided_slice %44 {offsets = [0, 0], sizes = [16, 8], strides = [1, 1]} : vector<16x96xf32> to vector<16x8xf32>
    %46 = arith.truncf %45 : vector<16x8xf32> to vector<16x8xbf16>
    %47 = vector.extract_strided_slice %44 {offsets = [0, 32], sizes = [16, 8], strides = [1, 1]} : vector<16x96xf32> to vector<16x8xf32>
    %48 = arith.truncf %47 : vector<16x8xf32> to vector<16x8xbf16>
    %49 = vector.extract_strided_slice %44 {offsets = [0, 64], sizes = [16, 8], strides = [1, 1]} : vector<16x96xf32> to vector<16x8xf32>
    %50 = arith.truncf %49 : vector<16x8xf32> to vector<16x8xbf16>
    %cst_28 = arith.constant dense<0.000000e+00> : vector<16x16xf32>
    %51 = tpu.matmul %46, %48, %cst_28 {dimension_numbers = #tpu.dot_dimension_numbers<[1], [1], [0], [0], [0, 0, 1, 0], [], []>} : vector<16x8xbf16>, vector<16x8xbf16>, vector<16x16xf32> -> vector<16x16xf32>
    %cst_29 = arith.constant 0.353553385 : f32
    %52 = vector.broadcast %cst_29 : f32 to vector<16x16xf32>
    %53 = arith.mulf %51, %52 : vector<16x16xf32>
    %54 = arith.addf %53, %4 : vector<16x16xf32>
    %cst_30 = arith.constant dense<0xFF800000> : vector<16xf32>
    %55 = vector.multi_reduction <maximumf>, %54, %cst_30 [1] : vector<16x16xf32> to vector<16xf32>
    %56 = vector.shape_cast %55 : vector<16xf32> to vector<16x1xf32>
    %57 = vector.broadcast %56 : vector<16x1xf32> to vector<16x16xf32>
    %58 = arith.subf %54, %57 : vector<16x16xf32>
    %59 = math.exp %58 : vector<16x16xf32>
    %cst_31 = arith.constant dense<0.000000e+00> : vector<16xf32>
    %60 = vector.multi_reduction <add>, %59, %cst_31 [1] : vector<16x16xf32> to vector<16xf32>
    %61 = vector.shape_cast %60 : vector<16xf32> to vector<16x1xf32>
    %62 = vector.broadcast %61 : vector<16x1xf32> to vector<16x16xf32>
    %63 = arith.divf %59, %62 : vector<16x16xf32>
    %64 = arith.truncf %63 : vector<16x16xf32> to vector<16x16xbf16>
    %cst_32 = arith.constant dense<0.000000e+00> : vector<16x8xf32>
    %65 = tpu.matmul %64, %50, %cst_32 {dimension_numbers = #tpu.dot_dimension_numbers<[1], [0], [0], [1], [0, 0, 1, 1], [], []>} : vector<16x16xbf16>, vector<16x8xbf16>, vector<16x8xf32> -> vector<16x8xf32>
    %66 = arith.truncf %65 : vector<16x8xf32> to vector<16x8xbf16>
    %67 = vector.extract_strided_slice %13 {offsets = [0, 0], sizes = [8, 32], strides = [1, 1]} : vector<32x32xbf16> to vector<8x32xbf16>
    %cst_33 = arith.constant dense<0.000000e+00> : vector<16x32xf32>
    %68 = tpu.matmul %66, %67, %cst_33 {dimension_numbers = #tpu.dot_dimension_numbers<[1], [0], [0], [1], [0, 0, 1, 1], [], []>} : vector<16x8xbf16>, vector<8x32xbf16>, vector<16x32xf32> -> vector<16x32xf32>
    %69 = vector.extract_strided_slice %44 {offsets = [0, 8], sizes = [16, 8], strides = [1, 1]} : vector<16x96xf32> to vector<16x8xf32>
    %70 = arith.truncf %69 : vector<16x8xf32> to vector<16x8xbf16>
    %71 = vector.extract_strided_slice %44 {offsets = [0, 40], sizes = [16, 8], strides = [1, 1]} : vector<16x96xf32> to vector<16x8xf32>
    %72 = arith.truncf %71 : vector<16x8xf32> to vector<16x8xbf16>
    %73 = vector.extract_strided_slice %44 {offsets = [0, 72], sizes = [16, 8], strides = [1, 1]} : vector<16x96xf32> to vector<16x8xf32>
    %74 = arith.truncf %73 : vector<16x8xf32> to vector<16x8xbf16>
    %cst_34 = arith.constant dense<0.000000e+00> : vector<16x16xf32>
    %75 = tpu.matmul %70, %72, %cst_34 {dimension_numbers = #tpu.dot_dimension_numbers<[1], [1], [0], [0], [0, 0, 1, 0], [], []>} : vector<16x8xbf16>, vector<16x8xbf16>, vector<16x16xf32> -> vector<16x16xf32>
    %cst_35 = arith.constant 0.353553385 : f32
    %76 = vector.broadcast %cst_35 : f32 to vector<16x16xf32>
    %77 = arith.mulf %75, %76 : vector<16x16xf32>
    %78 = arith.addf %77, %4 : vector<16x16xf32>
    %cst_36 = arith.constant dense<0xFF800000> : vector<16xf32>
    %79 = vector.multi_reduction <maximumf>, %78, %cst_36 [1] : vector<16x16xf32> to vector<16xf32>
    %80 = vector.shape_cast %79 : vector<16xf32> to vector<16x1xf32>
    %81 = vector.broadcast %80 : vector<16x1xf32> to vector<16x16xf32>
    %82 = arith.subf %78, %81 : vector<16x16xf32>
    %83 = math.exp %82 : vector<16x16xf32>
    %cst_37 = arith.constant dense<0.000000e+00> : vector<16xf32>
    %84 = vector.multi_reduction <add>, %83, %cst_37 [1] : vector<16x16xf32> to vector<16xf32>
    %85 = vector.shape_cast %84 : vector<16xf32> to vector<16x1xf32>
    %86 = vector.broadcast %85 : vector<16x1xf32> to vector<16x16xf32>
    %87 = arith.divf %83, %86 : vector<16x16xf32>
    %88 = arith.truncf %87 : vector<16x16xf32> to vector<16x16xbf16>
    %cst_38 = arith.constant dense<0.000000e+00> : vector<16x8xf32>
    %89 = tpu.matmul %88, %74, %cst_38 {dimension_numbers = #tpu.dot_dimension_numbers<[1], [0], [0], [1], [0, 0, 1, 1], [], []>} : vector<16x16xbf16>, vector<16x8xbf16>, vector<16x8xf32> -> vector<16x8xf32>
    %90 = arith.truncf %89 : vector<16x8xf32> to vector<16x8xbf16>
    %91 = vector.extract_strided_slice %13 {offsets = [8, 0], sizes = [8, 32], strides = [1, 1]} : vector<32x32xbf16> to vector<8x32xbf16>
    %cst_39 = arith.constant dense<0.000000e+00> : vector<16x32xf32>
    %92 = tpu.matmul %90, %91, %cst_39 {dimension_numbers = #tpu.dot_dimension_numbers<[1], [0], [0], [1], [0, 0, 1, 1], [], []>} : vector<16x8xbf16>, vector<8x32xbf16>, vector<16x32xf32> -> vector<16x32xf32>
    %93 = arith.addf %68, %92 : vector<16x32xf32>
    %94 = vector.extract_strided_slice %44 {offsets = [0, 16], sizes = [16, 8], strides = [1, 1]} : vector<16x96xf32> to vector<16x8xf32>
    %95 = arith.truncf %94 : vector<16x8xf32> to vector<16x8xbf16>
    %96 = vector.extract_strided_slice %44 {offsets = [0, 48], sizes = [16, 8], strides = [1, 1]} : vector<16x96xf32> to vector<16x8xf32>
    %97 = arith.truncf %96 : vector<16x8xf32> to vector<16x8xbf16>
    %98 = vector.extract_strided_slice %44 {offsets = [0, 80], sizes = [16, 8], strides = [1, 1]} : vector<16x96xf32> to vector<16x8xf32>
    %99 = arith.truncf %98 : vector<16x8xf32> to vector<16x8xbf16>
    %cst_40 = arith.constant dense<0.000000e+00> : vector<16x16xf32>
    %100 = tpu.matmul %95, %97, %cst_40 {dimension_numbers = #tpu.dot_dimension_numbers<[1], [1], [0], [0], [0, 0, 1, 0], [], []>} : vector<16x8xbf16>, vector<16x8xbf16>, vector<16x16xf32> -> vector<16x16xf32>
    %cst_41 = arith.constant 0.353553385 : f32
    %101 = vector.broadcast %cst_41 : f32 to vector<16x16xf32>
    %102 = arith.mulf %100, %101 : vector<16x16xf32>
    %103 = arith.addf %102, %4 : vector<16x16xf32>
    %cst_42 = arith.constant dense<0xFF800000> : vector<16xf32>
    %104 = vector.multi_reduction <maximumf>, %103, %cst_42 [1] : vector<16x16xf32> to vector<16xf32>
    %105 = vector.shape_cast %104 : vector<16xf32> to vector<16x1xf32>
    %106 = vector.broadcast %105 : vector<16x1xf32> to vector<16x16xf32>
    %107 = arith.subf %103, %106 : vector<16x16xf32>
    %108 = math.exp %107 : vector<16x16xf32>
    %cst_43 = arith.constant dense<0.000000e+00> : vector<16xf32>
    %109 = vector.multi_reduction <add>, %108, %cst_43 [1] : vector<16x16xf32> to vector<16xf32>
    %110 = vector.shape_cast %109 : vector<16xf32> to vector<16x1xf32>
    %111 = vector.broadcast %110 : vector<16x1xf32> to vector<16x16xf32>
    %112 = arith.divf %108, %111 : vector<16x16xf32>
    %113 = arith.truncf %112 : vector<16x16xf32> to vector<16x16xbf16>
    %cst_44 = arith.constant dense<0.000000e+00> : vector<16x8xf32>
    %114 = tpu.matmul %113, %99, %cst_44 {dimension_numbers = #tpu.dot_dimension_numbers<[1], [0], [0], [1], [0, 0, 1, 1], [], []>} : vector<16x16xbf16>, vector<16x8xbf16>, vector<16x8xf32> -> vector<16x8xf32>
    %115 = arith.truncf %114 : vector<16x8xf32> to vector<16x8xbf16>
    %116 = vector.extract_strided_slice %13 {offsets = [16, 0], sizes = [8, 32], strides = [1, 1]} : vector<32x32xbf16> to vector<8x32xbf16>
    %cst_45 = arith.constant dense<0.000000e+00> : vector<16x32xf32>
    %117 = tpu.matmul %115, %116, %cst_45 {dimension_numbers = #tpu.dot_dimension_numbers<[1], [0], [0], [1], [0, 0, 1, 1], [], []>} : vector<16x8xbf16>, vector<8x32xbf16>, vector<16x32xf32> -> vector<16x32xf32>
    %118 = arith.addf %93, %117 : vector<16x32xf32>
    %119 = vector.extract_strided_slice %44 {offsets = [0, 24], sizes = [16, 8], strides = [1, 1]} : vector<16x96xf32> to vector<16x8xf32>
    %120 = arith.truncf %119 : vector<16x8xf32> to vector<16x8xbf16>
    %121 = vector.extract_strided_slice %44 {offsets = [0, 56], sizes = [16, 8], strides = [1, 1]} : vector<16x96xf32> to vector<16x8xf32>
    %122 = arith.truncf %121 : vector<16x8xf32> to vector<16x8xbf16>
    %123 = vector.extract_strided_slice %44 {offsets = [0, 88], sizes = [16, 8], strides = [1, 1]} : vector<16x96xf32> to vector<16x8xf32>
    %124 = arith.truncf %123 : vector<16x8xf32> to vector<16x8xbf16>
    %cst_46 = arith.constant dense<0.000000e+00> : vector<16x16xf32>
    %125 = tpu.matmul %120, %122, %cst_46 {dimension_numbers = #tpu.dot_dimension_numbers<[1], [1], [0], [0], [0, 0, 1, 0], [], []>} : vector<16x8xbf16>, vector<16x8xbf16>, vector<16x16xf32> -> vector<16x16xf32>
    %cst_47 = arith.constant 0.353553385 : f32
    %126 = vector.broadcast %cst_47 : f32 to vector<16x16xf32>
    %127 = arith.mulf %125, %126 : vector<16x16xf32>
    %128 = arith.addf %127, %4 : vector<16x16xf32>
    %cst_48 = arith.constant dense<0xFF800000> : vector<16xf32>
    %129 = vector.multi_reduction <maximumf>, %128, %cst_48 [1] : vector<16x16xf32> to vector<16xf32>
    %130 = vector.shape_cast %129 : vector<16xf32> to vector<16x1xf32>
    %131 = vector.broadcast %130 : vector<16x1xf32> to vector<16x16xf32>
    %132 = arith.subf %128, %131 : vector<16x16xf32>
    %133 = math.exp %132 : vector<16x16xf32>
    %cst_49 = arith.constant dense<0.000000e+00> : vector<16xf32>
    %134 = vector.multi_reduction <add>, %133, %cst_49 [1] : vector<16x16xf32> to vector<16xf32>
    %135 = vector.shape_cast %134 : vector<16xf32> to vector<16x1xf32>
    %136 = vector.broadcast %135 : vector<16x1xf32> to vector<16x16xf32>
    %137 = arith.divf %133, %136 : vector<16x16xf32>
    %138 = arith.truncf %137 : vector<16x16xf32> to vector<16x16xbf16>
    %cst_50 = arith.constant dense<0.000000e+00> : vector<16x8xf32>
    %139 = tpu.matmul %138, %124, %cst_50 {dimension_numbers = #tpu.dot_dimension_numbers<[1], [0], [0], [1], [0, 0, 1, 1], [], []>} : vector<16x16xbf16>, vector<16x8xbf16>, vector<16x8xf32> -> vector<16x8xf32>
    %140 = arith.truncf %139 : vector<16x8xf32> to vector<16x8xbf16>
    %141 = vector.extract_strided_slice %13 {offsets = [24, 0], sizes = [8, 32], strides = [1, 1]} : vector<32x32xbf16> to vector<8x32xbf16>
    %cst_51 = arith.constant dense<0.000000e+00> : vector<16x32xf32>
    %142 = tpu.matmul %140, %141, %cst_51 {dimension_numbers = #tpu.dot_dimension_numbers<[1], [0], [0], [1], [0, 0, 1, 1], [], []>} : vector<16x8xbf16>, vector<8x32xbf16>, vector<16x32xf32> -> vector<16x32xf32>
    %143 = arith.addf %118, %142 : vector<16x32xf32>
    %144 = vector.broadcast %16 : vector<1x32xf32> to vector<16x32xf32>
    %145 = arith.addf %143, %144 : vector<16x32xf32>
    %146 = arith.addf %3, %145 : vector<16x32xf32>
    %cst_52 = arith.constant dense<0.000000e+00> : vector<16xf32>
    %147 = vector.multi_reduction <add>, %146, %cst_52 [1] : vector<16x32xf32> to vector<16xf32>
    %148 = vector.shape_cast %147 : vector<16xf32> to vector<16x1xf32>
    %cst_53 = arith.constant 3.200000e+01 : f32
    %149 = vector.broadcast %cst_53 : f32 to vector<16x1xf32>
    %150 = arith.divf %148, %149 : vector<16x1xf32>
    %151 = vector.broadcast %150 : vector<16x1xf32> to vector<16x32xf32>
    %152 = arith.subf %146, %151 : vector<16x32xf32>
    %153 = vector.broadcast %150 : vector<16x1xf32> to vector<16x32xf32>
    %154 = arith.subf %146, %153 : vector<16x32xf32>
    %155 = arith.mulf %152, %154 : vector<16x32xf32>
    %cst_54 = arith.constant dense<0.000000e+00> : vector<16xf32>
    %156 = vector.multi_reduction <add>, %155, %cst_54 [1] : vector<16x32xf32> to vector<16xf32>
    %157 = vector.shape_cast %156 : vector<16xf32> to vector<16x1xf32>
    %cst_55 = arith.constant 3.200000e+01 : f32
    %158 = vector.broadcast %cst_55 : f32 to vector<16x1xf32>
    %159 = arith.divf %157, %158 : vector<16x1xf32>
    %160 = vector.broadcast %150 : vector<16x1xf32> to vector<16x32xf32>
    %161 = arith.subf %146, %160 : vector<16x32xf32>
    %cst_56 = arith.constant 9.99999997E-7 : f32
    %162 = vector.broadcast %cst_56 : f32 to vector<16x1xf32>
    %163 = arith.addf %159, %162 : vector<16x1xf32>
    %164 = math.rsqrt %163 : vector<16x1xf32>
    %165 = vector.broadcast %164 : vector<16x1xf32> to vector<16x32xf32>
    %166 = arith.mulf %161, %165 : vector<16x32xf32>
    %167 = vector.broadcast %19 : vector<1x32xf32> to vector<16x32xf32>
    %168 = arith.mulf %166, %167 : vector<16x32xf32>
    %169 = vector.broadcast %22 : vector<1x32xf32> to vector<16x32xf32>
    %170 = arith.addf %168, %169 : vector<16x32xf32>
    %c0_57 = arith.constant 0 : index
    %c0_58 = arith.constant 0 : index
    %c0_59 = arith.constant 0 : index
    %171 = vector.load %arg16[%c0_57, %c0_58, %c0_59] : memref<1x16x32xf32, #tpu.memory_space<vmem>>, vector<1x16x32xf32>
    %172 = vector.shape_cast %171 : vector<1x16x32xf32> to vector<16x32xf32>
    %173 = vector.shape_cast %170 : vector<16x32xf32> to vector<1x16x32xf32>
    tpu.vector_store %arg16[%c0_57, %c0_58, %c0_59], %173 {strides = array<i32>} : memref<1x16x32xf32, #tpu.memory_space<vmem>>, vector<1x16x32xf32>,
    %174 = arith.truncf %170 : vector<16x32xf32> to vector<16x32xbf16>
    %cst_60 = arith.constant dense<0.000000e+00> : vector<16x64xf32>
    %175 = tpu.matmul %174, %25, %cst_60 {dimension_numbers = #tpu.dot_dimension_numbers<[1], [0], [0], [1], [0, 0, 1, 1], [], []>} : vector<16x32xbf16>, vector<32x64xbf16>, vector<16x64xf32> -> vector<16x64xf32>
    %176 = vector.broadcast %28 : vector<1x64xf32> to vector<16x64xf32>
    %177 = arith.addf %175, %176 : vector<16x64xf32>
    %cst_61 = arith.constant 5.000000e-01 : f32
    %178 = vector.broadcast %cst_61 : f32 to vector<16x64xf32>
    %179 = arith.mulf %178, %177 : vector<16x64xf32>
    %cst_62 = arith.constant 0.707106769 : f32
    %180 = vector.broadcast %cst_62 : f32 to vector<16x64xf32>
    %181 = arith.mulf %177, %180 : vector<16x64xf32>
    %cst_63 = arith.constant 0.000000e+00 : f32
    %182 = vector.broadcast %cst_63 : f32 to vector<16x64xf32>
    %183 = arith.cmpf oge, %181, %182 : vector<16x64xf32>
    %cst_64 = arith.constant 1.000000e+00 : f32
    %cst_65 = arith.constant -1.000000e+00 : f32
    %184 = vector.broadcast %cst_64 : f32 to vector<16x64xf32>
    %185 = vector.broadcast %cst_65 : f32 to vector<16x64xf32>
    %186 = arith.select %183, %184, %185 : vector<16x64xi1>, vector<16x64xf32>
    %187 = math.absf %181 : vector<16x64xf32>
    %cst_66 = arith.constant 0.327591091 : f32
    %188 = vector.broadcast %cst_66 : f32 to vector<16x64xf32>
    %189 = arith.mulf %188, %187 : vector<16x64xf32>
    %cst_67 = arith.constant 1.000000e+00 : f32
    %190 = vector.broadcast %cst_67 : f32 to vector<16x64xf32>
    %191 = arith.addf %190, %189 : vector<16x64xf32>
    %cst_68 = arith.constant 1.000000e+00 : f32
    %192 = vector.broadcast %cst_68 : f32 to vector<16x64xf32>
    %193 = arith.divf %192, %191 : vector<16x64xf32>
    %cst_69 = arith.constant 1.06140542 : f32
    %194 = vector.broadcast %cst_69 : f32 to vector<16x64xf32>
    %195 = arith.mulf %194, %193 : vector<16x64xf32>
    %cst_70 = arith.constant -1.45315206 : f32
    %196 = vector.broadcast %cst_70 : f32 to vector<16x64xf32>
    %197 = arith.addf %195, %196 : vector<16x64xf32>
    %198 = arith.mulf %197, %193 : vector<16x64xf32>
    %cst_71 = arith.constant 1.42141378 : f32
    %199 = vector.broadcast %cst_71 : f32 to vector<16x64xf32>
    %200 = arith.addf %198, %199 : vector<16x64xf32>
    %201 = arith.mulf %200, %193 : vector<16x64xf32>
    %cst_72 = arith.constant -0.284496725 : f32
    %202 = vector.broadcast %cst_72 : f32 to vector<16x64xf32>
    %203 = arith.addf %201, %202 : vector<16x64xf32>
    %204 = arith.mulf %203, %193 : vector<16x64xf32>
    %cst_73 = arith.constant 0.254829586 : f32
    %205 = vector.broadcast %cst_73 : f32 to vector<16x64xf32>
    %206 = arith.addf %204, %205 : vector<16x64xf32>
    %207 = arith.mulf %206, %193 : vector<16x64xf32>
    %cst_74 = arith.constant 0.000000e+00 : f32
    %208 = vector.broadcast %cst_74 : f32 to vector<16x64xf32>
    %209 = arith.subf %208, %187 : vector<16x64xf32>
    %210 = arith.mulf %209, %187 : vector<16x64xf32>
    %211 = math.exp %210 : vector<16x64xf32>
    %212 = arith.mulf %207, %211 : vector<16x64xf32>
    %cst_75 = arith.constant 1.000000e+00 : f32
    %213 = vector.broadcast %cst_75 : f32 to vector<16x64xf32>
    %214 = arith.subf %213, %212 : vector<16x64xf32>
    %215 = arith.mulf %186, %214 : vector<16x64xf32>
    %cst_76 = arith.constant 1.000000e+00 : f32
    %216 = vector.broadcast %cst_76 : f32 to vector<16x64xf32>
    %217 = arith.addf %216, %215 : vector<16x64xf32>
    %218 = arith.mulf %179, %217 : vector<16x64xf32>
    %219 = arith.truncf %218 : vector<16x64xf32> to vector<16x64xbf16>
    %cst_77 = arith.constant dense<0.000000e+00> : vector<16x32xf32>
    %220 = tpu.matmul %219, %31, %cst_77 {dimension_numbers = #tpu.dot_dimension_numbers<[1], [0], [0], [1], [0, 0, 1, 1], [], []>} : vector<16x64xbf16>, vector<64x32xbf16>, vector<16x32xf32> -> vector<16x32xf32>
    %221 = vector.broadcast %34 : vector<1x32xf32> to vector<16x32xf32>
    %222 = arith.addf %220, %221 : vector<16x32xf32>
    %223 = arith.addf %222, %170 : vector<16x32xf32>
    %cst_78 = arith.constant dense<0.000000e+00> : vector<16xf32>
    %224 = vector.multi_reduction <add>, %223, %cst_78 [1] : vector<16x32xf32> to vector<16xf32>
    %225 = vector.shape_cast %224 : vector<16xf32> to vector<16x1xf32>
    %cst_79 = arith.constant 3.200000e+01 : f32
    %226 = vector.broadcast %cst_79 : f32 to vector<16x1xf32>
    %227 = arith.divf %225, %226 : vector<16x1xf32>
    %228 = vector.broadcast %227 : vector<16x1xf32> to vector<16x32xf32>
    %229 = arith.subf %223, %228 : vector<16x32xf32>
    %230 = vector.broadcast %227 : vector<16x1xf32> to vector<16x32xf32>
    %231 = arith.subf %223, %230 : vector<16x32xf32>
    %232 = arith.mulf %229, %231 : vector<16x32xf32>
    %cst_80 = arith.constant dense<0.000000e+00> : vector<16xf32>
    %233 = vector.multi_reduction <add>, %232, %cst_80 [1] : vector<16x32xf32> to vector<16xf32>
    %234 = vector.shape_cast %233 : vector<16xf32> to vector<16x1xf32>
    %cst_81 = arith.constant 3.200000e+01 : f32
    %235 = vector.broadcast %cst_81 : f32 to vector<16x1xf32>
    %236 = arith.divf %234, %235 : vector<16x1xf32>
    %237 = vector.broadcast %227 : vector<16x1xf32> to vector<16x32xf32>
    %238 = arith.subf %223, %237 : vector<16x32xf32>
    %cst_82 = arith.constant 9.99999997E-7 : f32
    %239 = vector.broadcast %cst_82 : f32 to vector<16x1xf32>
    %240 = arith.addf %236, %239 : vector<16x1xf32>
    %241 = math.rsqrt %240 : vector<16x1xf32>
    %242 = vector.broadcast %241 : vector<16x1xf32> to vector<16x32xf32>
    %243 = arith.mulf %238, %242 : vector<16x32xf32>
    %244 = vector.broadcast %37 : vector<1x32xf32> to vector<16x32xf32>
    %245 = arith.mulf %243, %244 : vector<16x32xf32>
    %246 = vector.broadcast %40 : vector<1x32xf32> to vector<16x32xf32>
    %247 = arith.addf %245, %246 : vector<16x32xf32>
    %c0_83 = arith.constant 0 : index
    %c0_84 = arith.constant 0 : index
    %248 = vector.load %arg15[%c0_83, %c0_84] : memref<16x32xf32, #tpu.memory_space<vmem>>, vector<16x32xf32>
    tpu.vector_store %arg15[%c0_83, %c0_84], %247 {strides = array<i32>} : memref<16x32xf32, #tpu.memory_space<vmem>>, vector<16x32xf32>,
    return
  }
  func.func @transform_0(%arg0: i32) -> (i32, i32) {
    %c0_i32 = arith.constant 0 : i32
    %c0_i32_0 = arith.constant 0 : i32
    %c0_i32_1 = arith.constant 0 : i32
    return %c0_i32, %c0_i32_0 : i32, i32
  }
  func.func @transform_1(%arg0: i32) -> (i32, i32) {
    %c0_i32 = arith.constant 0 : i32
    %c0_i32_0 = arith.constant 0 : i32
    %c0_i32_1 = arith.constant 0 : i32
    return %c0_i32, %c0_i32_0 : i32, i32
  }
  func.func @transform_2(%arg0: i32) -> (i32, i32, i32) {
    %c0_i32 = arith.constant 0 : i32
    %c0_i32_0 = arith.constant 0 : i32
    %c0_i32_1 = arith.constant 0 : i32
    %c0_i32_2 = arith.constant 0 : i32
    return %c0_i32, %c0_i32_0, %c0_i32_1 : i32, i32, i32
  }
  func.func @transform_3(%arg0: i32) -> (i32, i32, i32) {
    %c0_i32 = arith.constant 0 : i32
    %c0_i32_0 = arith.constant 0 : i32
    %c0_i32_1 = arith.constant 0 : i32
    %c0_i32_2 = arith.constant 0 : i32
    return %c0_i32, %c0_i32_0, %c0_i32_1 : i32, i32, i32
  }
  func.func @transform_4(%arg0: i32) -> (i32, i32, i32) {
    %c0_i32 = arith.constant 0 : i32
    %c0_i32_0 = arith.constant 0 : i32
    %c0_i32_1 = arith.constant 0 : i32
    %c0_i32_2 = arith.constant 0 : i32
    return %c0_i32, %c0_i32_0, %c0_i32_1 : i32, i32, i32
  }
  func.func @transform_5(%arg0: i32) -> (i32, i32, i32) {
    %c0_i32 = arith.constant 0 : i32
    %c0_i32_0 = arith.constant 0 : i32
    %c0_i32_1 = arith.constant 0 : i32
    %c0_i32_2 = arith.constant 0 : i32
    return %c0_i32, %c0_i32_0, %c0_i32_1 : i32, i32, i32
  }
  func.func @transform_6(%arg0: i32) -> (i32, i32, i32) {
    %c0_i32 = arith.constant 0 : i32
    %c0_i32_0 = arith.constant 0 : i32
    %c0_i32_1 = arith.constant 0 : i32
    %c0_i32_2 = arith.constant 0 : i32
    return %c0_i32, %c0_i32_0, %c0_i32_1 : i32, i32, i32
  }
  func.func @transform_7(%arg0: i32) -> (i32, i32, i32) {
    %c0_i32 = arith.constant 0 : i32
    %c0_i32_0 = arith.constant 0 : i32
    %c0_i32_1 = arith.constant 0 : i32
    %c0_i32_2 = arith.constant 0 : i32
    return %c0_i32, %c0_i32_0, %c0_i32_1 : i32, i32, i32
  }
  func.func @transform_8(%arg0: i32) -> (i32, i32, i32) {
    %c0_i32 = arith.constant 0 : i32
    %c0_i32_0 = arith.constant 0 : i32
    %c0_i32_1 = arith.constant 0 : i32
    %c0_i32_2 = arith.constant 0 : i32
    return %c0_i32, %c0_i32_0, %c0_i32_1 : i32, i32, i32
  }
  func.func @transform_9(%arg0: i32) -> (i32, i32, i32) {
    %c0_i32 = arith.constant 0 : i32
    %c0_i32_0 = arith.constant 0 : i32
    %c0_i32_1 = arith.constant 0 : i32
    %c0_i32_2 = arith.constant 0 : i32
    return %c0_i32, %c0_i32_0, %c0_i32_1 : i32, i32, i32
  }
  func.func @transform_10(%arg0: i32) -> (i32, i32, i32) {
    %c0_i32 = arith.constant 0 : i32
    %c0_i32_0 = arith.constant 0 : i32
    %c0_i32_1 = arith.constant 0 : i32
    %c0_i32_2 = arith.constant 0 : i32
    return %c0_i32, %c0_i32_0, %c0_i32_1 : i32, i32, i32
  }
  func.func @transform_11(%arg0: i32) -> (i32, i32, i32) {
    %c0_i32 = arith.constant 0 : i32
    %c0_i32_0 = arith.constant 0 : i32
    %c0_i32_1 = arith.constant 0 : i32
    %c0_i32_2 = arith.constant 0 : i32
    return %c0_i32, %c0_i32_0, %c0_i32_1 : i32, i32, i32
  }
  func.func @transform_12(%arg0: i32) -> (i32, i32, i32) {
    %c0_i32 = arith.constant 0 : i32
    %c0_i32_0 = arith.constant 0 : i32
    %c0_i32_1 = arith.constant 0 : i32
    %c0_i32_2 = arith.constant 0 : i32
    return %c0_i32, %c0_i32_0, %c0_i32_1 : i32, i32, i32
  }
  func.func @transform_13(%arg0: i32) -> (i32, i32, i32) {
    %c0_i32 = arith.constant 0 : i32
    %c0_i32_0 = arith.constant 0 : i32
    %c0_i32_1 = arith.constant 0 : i32
    %c0_i32_2 = arith.constant 0 : i32
    return %c0_i32, %c0_i32_0, %c0_i32_1 : i32, i32, i32
  }
  func.func @transform_14(%arg0: i32) -> (i32, i32) {
    %c0_i32 = arith.constant 0 : i32
    %c0_i32_0 = arith.constant 0 : i32
    %c0_i32_1 = arith.constant 0 : i32
    return %c0_i32, %c0_i32_0 : i32, i32
  }
  func.func @transform_15(%arg0: i32) -> (i32, i32, i32) {
    %c0_i32 = arith.constant 0 : i32
    %c0_i32_0 = arith.constant 0 : i32
    %c0_i32_1 = arith.constant 0 : i32
    return %arg0, %c0_i32, %c0_i32_0 : i32, i32, i32
  }
}

</mosaic_0001>

<bundles_post_ra>
// kernel: tpu_custom_call.1
= control target key start
LH: loop header
LB: loop body
LE: loop exit
PB: predicated region body
PF: predicated region fallthrough
CT: control target
= control target key end

     0   :  { %s2667_s0 = inlined_call_operand.hbm [shape: f32[16,32], index: 0, kind: input, shape index: {}]   ;;  %s2668_s1 = inlined_call_operand.hbm [shape: f32[16,16], index: 1, kind: input, shape index: {}]   ;;  %s2669_s2 = inlined_call_operand.vmem [shape: bf16[2,32,96], index: 2, kind: input, shape index: {}]   ;;  %s2670_s3 = inlined_call_operand.hbm [shape: f32[2,1,96], index: 3, kind: input, shape index: {}]   ;;  %s2671_s4 = inlined_call_operand.vmem [shape: bf16[2,32,32], index: 4, kind: input, shape index: {}]   ;;  %s2672_s5 = inlined_call_operand.vmem [shape: f32[2,1,32], index: 5, kind: input, shape index: {}]   ;;  %s2673_s6 = inlined_call_operand.vmem [shape: f32[2,1,32], index: 6, kind: input, shape index: {}]   ;;  %s2674_s7 = inlined_call_operand.hbm [shape: f32[2,1,32], index: 7, kind: input, shape index: {}]   ;;  %s2675_s8 = inlined_call_operand.vmem [shape: bf16[2,32,64], index: 8, kind: input, shape index: {}]   ;;  %s2676_s9 = inlined_call_operand.vmem [shape: f32[2,1,64], index: 9, kind: input, shape index: {}]   ;;  %s2677_s10 = inlined_call_operand.vmem [shape: bf16[2,64,32], index: 10, kind: input, shape index: {}]   ;;  %s2678_s11 = inlined_call_operand.vmem [shape: f32[2,1,32], index: 11, kind: input, shape index: {}]   ;;  %s2679_s12 = inlined_call_operand.vmem [shape: f32[2,1,32], index: 12, kind: input, shape index: {}]   ;;  %s2680_s13 = inlined_call_operand.hbm [shape: f32[2,1,32], index: 13, kind: input, shape index: {}]   ;;  %s2681_s14 = inlined_call_operand.hbm [shape: f32[16,32], index: 14, kind: output, shape index: {0}]   ;;  %s2682_s15 = inlined_call_operand.hbm [shape: f32[2,16,32], index: 15, kind: output, shape index: {1}]  }
   0x1   :  { %2692 = sst [smem:[#allocation25_spill]] %s2667_s0 }
   0x2   :  { %2693 = sst [smem:[#allocation26_spill]] %s2668_s1 }
   0x3   :  { %2694 = sst [smem:[#allocation27_spill]] %s2674_s7 }
   0x4   :  { %2695 = sst [smem:[#allocation28_spill]] %s2677_s10 }
   0x5   :  { %2696 = sst [smem:[#allocation29_spill]] %s2679_s12 }
   0x6   :  { %2697 = sst [smem:[#allocation30_spill]] %s2681_s14 }
   0x7   :  { %2698 = sst [smem:[#allocation31_spill]] %s2682_s15 }
   0x8   :  { %21 = vsyncpa [#allocation3], 0 }
   0x9   :  { %22 = vsyncpa [#allocation6], 0 }
   0xa   :  { %23 = vsyncpa [#allocation9], 0 }
   0xb   :  { %24 = vsyncpa [#allocation4], 0 }
   0xc   :  { %25 = vsyncpa [#allocation13], 0 }
   0xd   :  { %27 = vsyncpa [#allocation13 + $0x1], 0  ;;  %s2212_s18 = smov 0   ;;  %s2214_s19 = smov 0  }
   0xe   :  { %s2216_s20 = smov 0   ;;  %s2218_s21 = smov 0  }
   0xf LB: > { %2699 = sst [smem:[#allocation19_spill]] %s2093_s18  ;;  %s2233_s22 = sadd.s32 4294967295, %s2105_s21   ;;  %s2105_s21 = sphi %s2218_s21, %s2726_s21   ;;  %s2101_s20 = sphi %s2216_s20, %s2728_s20   ;;  %s2097_s19 = sphi %s2214_s19, %s2730_s19   ;;  %s2093_s18 = sphi %s2212_s18, %s2729_s18  }
  0x10   : > { %2700 = sst [smem:[#allocation20_spill]] %s2101_s20  ;;  %s1575_s23 = sadd.s32 4294967294, %s2105_s21  }
  0x11   : > { %s2237_s24 = sadd.s32 1, %s2105_s21   ;;  %s355_s25 = sadd.s32 1, %s2101_s20 }
  0x12   : > { %2701 = sst [smem:[#allocation21_spill]] %s2237_s24  ;;  %s352_s26 = ssub.s32 %s2105_s21, %s2237_s24 }
  0x13   : > { %p365_p0 = scmp.ne.s32.totalorder %s2101_s20, %s2097_s19  ;;  %p353_p1 = scmp.eq.s32.totalorder %s352_s26, 0 }
  0x14   : > { %p366_p2 = scmp.eq.s32.totalorder %s2233_s22, 1  ;;  %p371_p3 = scmp.ne.s32.totalorder %s2097_s19, %s2093_s18 }
  0x15   : > { %p372_p4 = scmp.eq.s32.totalorder %s1575_s23, 1  ;;  %p1576_p7 = scmp.ge.s32.totalorder %s2105_s21, 1 }
  0x16   : > { %s2248_s27 = scalar_select %p353_p1, %s2101_s20, %s355_s25  }
  0x17   : > { %p2252_p5 = por %p366_p2, %p365_p0  ;;  %p2256_p6 = por %p372_p4, %p371_p3 }
  0x18   : > { %2702 = sst [smem:[#allocation22_spill]] %s2248_s27  ;;  %p379_p8 = scmp.lt.s32.totalorder %s2105_s21, 3 }
  0x19   : > { %s2703_s28 = scalar_select %p2252_p5, 1, 0 }
  0x1a   : > { %s2705_s29 = scalar_select %p2256_p6, 1, 0 }
  0x1b   : > { %2704 = sst [smem:[#allocation23_spill]] %s2703_s28  ;;  %p1577_p9 = scmp.ne.s32.totalorder %s2233_s22, 0 }
  0x1c   : > { %2706 = sst [smem:[#allocation24_spill]] %s2705_s29  ;;  %p1721_p10 = scmp.eq.s32.totalorder %s2233_s22, 0 }
  0x1d   : > { %p2264_p11 = pnand %p1576_p7, %p379_p8  ;;  %s2708_s1 = sld [smem:[#allocation26_spill]] }
  0x1e   : > { %s2107_s26 = smov [#allocation5]   ;;  %s2710_s7 = sld [smem:[#allocation27_spill]] }
  0x1f   : > { %p1701_p12 = pneg %p2264_p11  ;;  %s406_s27 = sshll.u32 %s2107_s26, 4  ;;  %s407_s27 = int_to_ptr.vmem [resolvable:$true] %s406_s27 }
  0x20   : > { %s2108_s16 = smov 128   ;;  %s2109_s17 = smov 8  }
  0x21   : > { %p2275_p13 = pnand %p1721_p10, %p1701_p12  ;;  %s2711_s0 = sld [smem:[#allocation25_spill]] }
  0x22   : > { %s2111_s26 = smov 16   ;;  %s2112_s12 = smov 1  }
  0x23   : > { %s404_s23 = sshll.u32 %s2708_s1, 4  ;;  %s2110_s1 = smov [#allocation8]   ;;  %s405_s23 = int_to_ptr.hbm [resolvable:$true] %s404_s23 }
  0x24   : > { %s444_s29 = sshll.u32 %s2710_s7, 4  ;;  %s446_s18 = sshll.u32 %s2110_s1, 4  ;;  %s445_s29 = int_to_ptr.hbm [resolvable:$true] %s444_s29  ;;  %s447_s18 = int_to_ptr.vmem [resolvable:$true] %s446_s18 }
  0x25   : > { %1707 = dma.hbm_to_vmem [thread:$0]  (!%p2275_p13), %s405_s23, 256, %s407_s27, [#allocation6], %s2108_s16, %s2108_s16, %s2109_s17  }
  0x26   : > { %1713 = dma.hbm_to_vmem [thread:$0]  (!%p2275_p13), %s445_s29, 32, %s447_s18, [#allocation9], %s2111_s26, %s2111_s26, %s2112_s12  }
  0x27   : > { %s390_s28 = sshll.u32 %s2711_s0, 4  ;;  %s421_s7 = sshll.u32 %s2670_s3, 4  ;;  %s391_s28 = int_to_ptr.hbm [resolvable:$true] %s390_s28  ;;  %s422_s7 = int_to_ptr.hbm [resolvable:$true] %s421_s7 }
  0x28   : > { %s2113_s27 = smov [#allocation2]   ;;  %s2114_s1 = smov [#allocation7]  }
  0x29   : > { %s392_s23 = sshll.u32 %s2113_s27, 4  ;;  %s423_s14 = sshll.u32 %s2114_s1, 4  ;;  %s393_s23 = int_to_ptr.vmem [resolvable:$true] %s392_s23  ;;  %s424_s14 = int_to_ptr.vmem [resolvable:$true] %s423_s14 }
  0x2a   : > { %1704 = dma.hbm_to_vmem [thread:$0]  (!%p2275_p13), %s391_s28, 256, %s393_s23, [#allocation3], %s2108_s16, %s2108_s16, %s2109_s17  }
  0x2b   : > { %s473_s10 = sshll.u32 %s2680_s13, 4  ;;  %s2115_s18 = smov [#allocation10]   ;;  %s474_s10 = int_to_ptr.hbm [resolvable:$true] %s473_s10 }
  0x2c   : > { %1710 = dma.hbm_to_vmem [thread:$0]  (!%p2275_p13), %s422_s7, 32, %s424_s14, [#allocation6], %s2111_s26, %s2111_s26, %s2112_s12  }
  0x2d   : > { %s475_s29 = sshll.u32 %s2115_s18, 4  ;;  %491 = sbr.rel (%p2264_p11) target bundleno = 2472 (0x9a8), region = 76  ;;  %s476_s29 = int_to_ptr.vmem [resolvable:$true] %s475_s29 }
  0x2e   : > { %1716 = dma.hbm_to_vmem [thread:$0]  (!%p2275_p13), %s474_s10, 32, %s476_s29, [#allocation9], %s2111_s26, %s2111_s26, %s2112_s12  }
  0x32   : > { %2072 = dma.done.wait (%p1721_p10), [#allocation3], 256  }
  0x33   : > { %2074 = vsyncadd (%p1721_p10), [#allocation3], 4294967040 }
  0x34   : > { %2076 = dma.done.wait (%p1721_p10), [#allocation6], 288  }
  0x35   : > { %2078 = vsyncadd (%p1721_p10), [#allocation6], 4294967008 }
  0x36   : > { %2080 = dma.done.wait (%p1721_p10), [#allocation9], 64  }
  0x37   : > { %2082 = vsyncadd (%p1721_p10), [#allocation9], 4294967232  ;;  %s552_s0 = sand.u32 1, %s2097_s19   ;;  %559 = sbr.rel (%p1577_p9) target bundleno = 63 (0x3f), region = 100 }
  0x38   : > { %s1588_s7 = sshll.u32 %s552_s0, 4 }
  0x39   : > { %s2318_s10 = scalar_lea.vmem [#allocation12], %s1588_s7 }
  0x3c   : > { %v560_v0 = vld [vmem:[#allocation2] sm:$0xff]  ;;  %vm562_vm0 = vcmask 261120   ;;  %v561_v1 = vld [vmem:[#allocation2 + $0x8] sm:$0xff] }
  0x3d   : > { %563 = vst.msk [vmem:[#allocation11] sm:$0xff] %vm562_vm0, %v560_v0 }
  0x3e   : > { %564 = vst.msk [vmem:[#allocation11 + $0x8] sm:$0xff] %vm562_vm0, %v561_v1 }
  0x3f PF: > { %s2323_s12 = sshll.u32 %s2233_s22, 4  ;;  %s1656_s16 = scalar_lea.vmem [#allocation7], %s2105_s21  ;;  %vm631_vm1 = vcmask 261120   ;;  %vm653_vm2 = vcmask 64512   ;;  %v2343_v16 = vld [vmem:[#allocation5] sm:$0xff]  ;;  %vm678_vm3 = vcmask 130048  }
  0x40   : > { %s571_s25 = scalar_lea.vmem %s2669_s2, %s2323_s12  ;;  %v1791_v8 = vld [vmem:[%s1656_s16 - $0x1] ss:$0 sm:$0xff]  ;;  %s2116_s17 = smov 96   ;;  %vm850_vm4 = vcmask 1043456  }
  0x41   : > { %v1655_v2 = vld [vmem:[%s571_s25 + $0x8] sm:$0xff]  ;;  %v1654_v3 = vld [vmem:[%s571_s25] sm:$0xff]  ;;  %v2347_v21 = vld [vmem:[#allocation5 + $0x8] sm:$0xff]  ;;  %s2117_s26 = smov 88   ;;  %s2118_s20 = smov 64  }
  0x42   : > { %641 = vmatpush.bf16.msra.mxu0 %v1655_v2  ;;  %s2119_s24 = smov 72   ;;  %s2120_s27 = smov 120  }
  0x43   : > { %s2121_s23 = smov 104   ;;  %s2122_s1 = smov 80  }
  0x44   : > { %v2330_v4 = vld [vmem:[#allocation11] sm:$0xff]  ;;  %s2123_s14 = smov 112   ;;  %s2367_s29 = scalar_lea.vmem %s2671_s4, %s2323_s12 }
  0x45   : > { %v2332_v5 = vld [vmem:[#allocation11 + $0x8] sm:$0xff]  ;;  %v580_v35 = vld [vmem:[%s2367_s29] sm:$0xf]  ;;  %s2124_s7 = smov 40   ;;  %s2125_s28 = smov 48  }
  0x46   : > { %v615_v6 = vpack.c.bf16 %v2332_v5, %v2330_v4  ;;  %642 = vmatpush.bf16.msra.mxu0 %v1654_v3  ;;  %v872_v37 = vsel %vm850_vm4, %v580_v35, 0  ;;  %s2126_s30 = smov 56   ;;  %s609_s16 = scalar_lea.vmem %s2678_s11, %s2233_s22 }
  0x49   : > { %1607 = vmatmul.msk.bf16.vlgmr.msra.gmra.mxu0 %vm631_vm1, %v615_v6 }
  0xc6   : > { %v644_v7 = vpop.f32.mrf.mxu0 }
  0xc7   : > { %v645_v10 = vadd.f32 %v1791_v8, %v644_v7 }
  0xce   : > { %v646_v9 = vpop.f32.mrf.mxu0 }
  0xcf   : > { %v647_v11 = vadd.f32 %v1791_v8, %v646_v9 }
  0xd1   : > { %v2337_v12 = vpack.c.bf16 %v647_v11, %v645_v10 }
  0xd3   : > { %651 = vrot.lane.b32.xlu0 %v2337_v12, %s2116_s17  ;;  %s584_s17 = scalar_lea.vmem %s2672_s5, %s2233_s22 }
 0x145   : > { %v652_v13 = vpop.permute.xlu0 %651 }
 0x146   : > { %v658_v14 = vsel %vm653_vm2, %v652_v13, 0 }
 0x147   : > { %667 = vmatpush.bf16.xpose.msra.mxu1 %v658_v14 }
 0x14e   : > { %1608 = vmatmul.msk.bf16.vlgmr.msra.gmra.mxu1 %vm653_vm2, %v2337_v12 }
 0x14f   : > { %881 = vmatpush.bf16.msrb.mxu1 %v872_v37 }
 0x1cb   : > { %v669_v15 = vpop.f32.mrf.mxu1 }
 0x1cc   : > { %v674_v17 = vmul.f32 0.35355338, %v669_v15 }
 0x1ce   : > { %v676_v18 = vadd.f32 %v674_v17, %v2343_v16 }
 0x1d0   : > { %v679_v19 = vsel %vm678_vm3, %v676_v18, -inf }
 0x1d1   : > { %680 = vmax.xlane.f32.xlu0 %v679_v19 }
 0x1d3   : > { %v671_v20 = vpop.f32.mrf.mxu1 }
 0x1d4   : > { %v675_v22 = vmul.f32 0.35355338, %v671_v20 }
 0x1d6   : > { %v677_v23 = vadd.f32 %v675_v22, %v2347_v21 }
 0x1d8   : > { %v682_v24 = vsel %vm678_vm3, %v677_v23, -inf }
 0x1d9   : > { %683 = vmax.xlane.f32.xlu1 %v682_v24 }
 0x244   : > { %v681_v25 = vpop.xlane.xlu0 %680 }
 0x245   : > { %v685_v26 = vsub.f32 %v676_v18, %v681_v25 }
 0x247   : > { %v687_v27 = vmul.f32 1.442695, %v685_v26 }
 0x249   : > { %1799 = vpow2.f32 %v687_v27 }
 0x24c   : > { %v684_v28 = vpop.xlane.xlu1 %683 }
 0x24d   : > { %v686_v29 = vsub.f32 %v677_v23, %v684_v28 }
 0x24f   : > { %v2351_v30 = vpop.eup %1799  ;;  %v689_v31 = vmul.f32 1.442695, %v686_v29 }
 0x250   : > { %v691_v32 = vsel %vm678_vm3, %v2351_v30, 0.0 }
 0x251   : > { %1801 = vpow2.f32 %v689_v31  ;;  %692 = vadd.xlane.f32.xlu1 %v691_v32 }
 0x257   : > { %v1802_v33 = vpop.eup %1801 }
 0x258   : > { %v694_v34 = vsel %vm678_vm3, %v1802_v33, 0.0 }
 0x259   : > { %695 = vadd.xlane.f32.xlu2 %v694_v34 }
 0x26a   : > { %751 = vrot.lane.b32.xlu1 %v2337_v12, %s2117_s26  ;;  %s2721_s26 = sld [smem:[#allocation31_spill]] }
 0x271   : > { %728 = vrot.lane.b32.xlu2 %v2337_v12, %s2118_s20  ;;  %s1666_s20 = sshll.u32 %s2233_s22, 5 }
 0x272   : > { %1010 = vrot.lane.b32.xlu1 %v2337_v12, %s2119_s24  ;;  %s586_s24 = scalar_lea.vmem %s2673_s6, %s2233_s22 }
 0x279   : > { %749 = vrot.lane.b32.xlu2 %v2337_v12, %s2120_s27  ;;  %s1660_s27 = scalar_lea.vmem [#allocation8], %s2105_s21 }
 0x27a   : > { %1008 = vrot.lane.b32.xlu1 %v2337_v12, %s2121_s23  ;;  %s2718_s23 = sld [smem:[#allocation28_spill]] }
 0x281   : > { %890 = vrot.lane.b32.xlu2 %v2337_v12, %s2122_s1  ;;  %s2579_s1 = scalar_lea.vmem %s2718_s23, %s1666_s20  ;;  %s1441_s20 = scalar_lea.hbm %s2721_s26, %s2323_s12 }
 0x282   : > { %s1416_s23 = scalar_lea.sflag [#allocation13], %s552_s0 }
 0x289   : > { %888 = vrot.lane.b32.xlu2 %v2337_v12, %s2123_s14  ;;  %s596_s14 = scalar_lea.vmem %s2676_s9, %s2233_s22 }
 0x2c4   : > { %v693_v36 = vpop.xlane.xlu1 %692 }
 0x2c5   : > { %1803 = vrcp.f32 %v693_v36  ;;  %v708_v47 = vand.u32 2147483648, %v693_v36  ;;  %vm702_vm6 = vweird.f32 %v693_v36  ;;  %v706_v48 = vand.u32 2147483647, %v693_v36 }
 0x2c7   : > { %v709_v54 = vor.u32 1.1754944e-38, %v708_v47  ;;  %vm707_vm9 = vcmp.eq.f32.partialorder %v706_v48, 8.507059e+37 }
 0x2cb   : > { %v1804_v38 = vpop.eup %1803 }
 0x2cc   : > { %v698_v39 = vmul.f32 %v1804_v38, %v693_v36  ;;  %v696_v40 = vpop.xlane.xlu2 %695  ;;  %vm703_vm5 = vweird.f32 %v1804_v38 }
 0x2cd   : > { %1805 = vrcp.f32 %v696_v40  ;;  %vm704_vm7 = vmor %vm702_vm6, %vm703_vm5  ;;  %v723_v50 = vand.u32 2147483648, %v696_v40  ;;  %v721_v52 = vand.u32 2147483647, %v696_v40  ;;  %vm717_vm10 = vweird.f32 %v696_v40 }
 0x2ce   : > { %v699_v41 = vsub.f32 1.0, %v698_v39 }
 0x2cf   : > { %v724_v56 = vor.u32 1.1754944e-38, %v723_v50  ;;  %vm722_vm12 = vcmp.eq.f32.partialorder %v721_v52, 8.507059e+37 }
 0x2d0   : > { %v700_v42 = vmul.f32 %v1804_v38, %v699_v41 }
 0x2d2   : > { %v701_v44 = vadd.f32 %v1804_v38, %v700_v42 }
 0x2d3   : > { %v1806_v43 = vpop.eup %1805 }
 0x2d4   : > { %v713_v45 = vmul.f32 %v1806_v43, %v696_v40  ;;  %v729_v46 = vpop.permute.xlu2 %728  ;;  %vm718_vm8 = vweird.f32 %v1806_v43  ;;  %v705_v53 = vsel %vm704_vm7, %v1804_v38, %v701_v44 }
 0x2d5   : > { %741 = vmatpush.bf16.msra.mxu2 %v729_v46  ;;  %vm719_vm11 = vmor %vm717_vm10, %vm718_vm8  ;;  %v710_v57 = vsel %vm707_vm9, %v709_v54, %v705_v53 }
 0x2d6   : > { %v714_v49 = vsub.f32 1.0, %v713_v45  ;;  %v711_v63 = vmul.f32 %v2351_v30, %v710_v57 }
 0x2d8   : > { %v715_v51 = vmul.f32 %v1806_v43, %v714_v49 }
 0x2da   : > { %v716_v55 = vadd.f32 %v1806_v43, %v715_v51 }
 0x2dc   : > { %v750_v58 = vpop.permute.xlu2 %749  ;;  %v752_v59 = vpop.permute.xlu1 %751  ;;  %v720_v60 = vsel %vm719_vm11, %v1806_v43, %v716_v55 }
 0x2dd   : > { %v757_v61 = vsel %vm653_vm2, %v752_v59, 0  ;;  %v725_v62 = vsel %vm722_vm12, %v724_v56, %v720_v60 }
 0x2de   : > { %766 = vmatpush.bf16.xpose.msra.mxu3 %v757_v61  ;;  %v726_v0 = vmul.f32 %v1802_v33, %v725_v62 }
 0x2e0   : > { %v727_v1 = vpack.c.bf16 %v726_v0, %v711_v63 }
 0x2e2   : > { %1609 = vmatmul.msk.bf16.vlgmr.msra.gmra.mxu2 %vm678_vm3, %v727_v1 }
 0x2e4   : > { %v891_v2 = vpop.permute.xlu2 %890  ;;  %v1011_v3 = vpop.permute.xlu1 %1010 }
 0x2e5   : > { %v1016_v6 = vsel %vm653_vm2, %v1011_v3, 0  ;;  %1610 = vmatmul.msk.bf16.vlgmr.msra.gmra.mxu3 %vm653_vm2, %v750_v58  ;;  %v896_v7 = vsel %vm653_vm2, %v891_v2, 0 }
 0x2e6   : > { %905 = vmatpush.bf16.xpose.msrb.mxu3 %v896_v7  ;;  %1025 = vmatpush.bf16.xpose.msra.mxu1 %v1016_v6 }
 0x2ec   : > { %v889_v8 = vpop.permute.xlu2 %888  ;;  %v1009_v27 = vpop.permute.xlu1 %1008 }
 0x2f5   : > { %1614 = vmatmul.msk.bf16.vlgmr.msrb.gmra.mxu3 %vm653_vm2, %v889_v8 }
 0x365   : > { %v743_v9 = vpop.f32.mrf.mxu2 }
 0x368   : > { %v768_v10 = vpop.f32.mrf.mxu3 }
 0x369   : > { %v773_v11 = vmul.f32 0.35355338, %v768_v10 }
 0x36b   : > { %v775_v13 = vadd.f32 %v773_v11, %v2343_v16 }
 0x36d   : > { %v745_v14 = vpop.f32.mrf.mxu2  ;;  %v777_v15 = vsel %vm678_vm3, %v775_v13, -inf }
 0x36e   : > { %v748_v17 = vpack.c.bf16 %v745_v14, %v743_v9  ;;  %778 = vmax.xlane.f32.xlu0 %v777_v15 }
 0x370   : > { %v770_v18 = vpop.f32.mrf.mxu3  ;;  %1613 = vmatmul.msk.bf16.vlgmr.msrb.gmra.mxu1 %vm653_vm2, %v748_v17 }
 0x371   : > { %v774_v19 = vmul.f32 0.35355338, %v770_v18 }
 0x373   : > { %v776_v20 = vadd.f32 %v774_v19, %v2347_v21 }
 0x375   : > { %v780_v22 = vsel %vm678_vm3, %v776_v20, -inf }
 0x376   : > { %781 = vmax.xlane.f32.xlu2 %v780_v22 }
 0x378   : > { %v907_v23 = vpop.f32.mrf.mxu3 }
 0x379   : > { %v912_v24 = vmul.f32 0.35355338, %v907_v23 }
 0x37b   : > { %v914_v25 = vadd.f32 %v912_v24, %v2343_v16 }
 0x37d   : > { %v916_v26 = vsel %vm678_vm3, %v914_v25, -inf }
 0x37e   : > { %917 = vmax.xlane.f32.xlu0 %v916_v26 }
 0x380   : > { %v909_v28 = vpop.f32.mrf.mxu3  ;;  %1617 = vmatmul.msk.bf16.vlgmr.msra.gmra.mxu1 %vm653_vm2, %v1009_v27 }
 0x381   : > { %v913_v29 = vmul.f32 0.35355338, %v909_v28 }
 0x383   : > { %v915_v30 = vadd.f32 %v913_v29, %v2347_v21 }
 0x385   : > { %v919_v31 = vsel %vm678_vm3, %v915_v30, -inf }
 0x386   : > { %920 = vmax.xlane.f32.xlu0 %v919_v31 }
 0x3e1   : > { %v779_v32 = vpop.xlane.xlu0 %778 }
 0x3e2   : > { %v783_v44 = vsub.f32 %v775_v13, %v779_v32 }
 0x3e4   : > { %v785_v47 = vmul.f32 1.442695, %v783_v44 }
 0x3e9   : > { %v782_v50 = vpop.xlane.xlu2 %781 }
 0x3ed   : > { %v2388_v33 = vpop.f32.mrf.mxu1 }
 0x3f1   : > { %v918_v34 = vpop.xlane.xlu0 %917 }
 0x3f2   : > { %v922_v36 = vsub.f32 %v914_v25, %v918_v34 }
 0x3f4   : > { %v924_v40 = vmul.f32 1.442695, %v922_v36 }
 0x3f5   : > { %v2390_v35 = vpop.f32.mrf.mxu1 }
 0x3f9   : > { %v921_v37 = vpop.xlane.xlu0 %920 }
 0x3fa   : > { %v923_v38 = vsub.f32 %v915_v30, %v921_v37 }
 0x3fc   : > { %v926_v39 = vmul.f32 1.442695, %v923_v38 }
 0x3fd   : > { %v1027_v41 = vpop.f32.mrf.mxu1 }
 0x3fe   : > { %1807 = vpow2.f32 %v926_v39  ;;  %v1032_v42 = vmul.f32 0.35355338, %v1027_v41 }
 0x3ff   : > { %1809 = vpow2.f32 %v924_v40 }
 0x400   : > { %v1034_v43 = vadd.f32 %v1032_v42, %v2343_v16  ;;  %1811 = vpow2.f32 %v785_v47  ;;  %v784_v16 = vsub.f32 %v776_v20, %v782_v50 }
 0x402   : > { %v1036_v45 = vsel %vm678_vm3, %v1034_v43, -inf  ;;  %v787_v56 = vmul.f32 1.442695, %v784_v16 }
 0x403   : > { %1037 = vmax.xlane.f32.xlu1 %v1036_v45 }
 0x404   : > { %v2394_v46 = vpop.eup %1807  ;;  %1813 = vpow2.f32 %v787_v56 }
 0x405   : > { %v1029_v48 = vpop.f32.mrf.mxu1  ;;  %v931_v49 = vsel %vm678_vm3, %v2394_v46, 0.0  ;;  %v2398_v52 = vpop.eup %1809 }
 0x406   : > { %v1033_v51 = vmul.f32 0.35355338, %v1029_v48  ;;  %932 = vadd.xlane.f32.xlu2 %v931_v49  ;;  %v928_v54 = vsel %vm678_vm3, %v2398_v52, 0.0  ;;  %v2404_v57 = vpop.eup %1811 }
 0x407   : > { %v789_v58 = vsel %vm678_vm3, %v2404_v57, 0.0 }
 0x408   : > { %v1035_v53 = vadd.f32 %v1033_v51, %v2347_v21 }
 0x40a   : > { %v1039_v55 = vsel %vm678_vm3, %v1035_v53, -inf  ;;  %v2408_v59 = vpop.eup %1813 }
 0x40b   : > { %929 = vadd.xlane.f32.xlu1 %v928_v54  ;;  %1040 = vmax.xlane.f32.xlu0 %v1039_v55  ;;  %v792_v21 = vsel %vm678_vm3, %v2408_v59, 0.0 }
 0x413   : > { %790 = vadd.xlane.f32.xlu0 %v789_v58 }
 0x41b   : > { %793 = vadd.xlane.f32.xlu0 %v792_v21 }
 0x424   : > { %1085 = vrot.lane.b32.xlu1 %v2337_v12, %s2124_s7  ;;  %s2719_s7 = sld [smem:[#allocation29_spill]] }
 0x476   : > { %v1038_v60 = vpop.xlane.xlu1 %1037 }
 0x477   : > { %v1042_v61 = vsub.f32 %v1034_v43, %v1038_v60 }
 0x479   : > { %v1044_v62 = vmul.f32 1.442695, %v1042_v61  ;;  %v2427_v11 = vpop.xlane.xlu2 %932 }
 0x47b   : > { %1815 = vpow2.f32 %v1044_v62 }
 0x47e   : > { %v1041_v63 = vpop.xlane.xlu0 %1040  ;;  %v2421_v8 = vpop.xlane.xlu1 %929 }
 0x47f   : > { %v1043_v0 = vsub.f32 %v1035_v53, %v1041_v63 }
 0x481   : > { %v2413_v1 = vpop.eup %1815  ;;  %v1046_v2 = vmul.f32 1.442695, %v1043_v0 }
 0x482   : > { %v1048_v3 = vsel %vm678_vm3, %v2413_v1, 0.0 }
 0x483   : > { %1049 = vadd.xlane.f32.xlu2 %v1048_v3  ;;  %1817 = vpow2.f32 %v1046_v2 }
 0x486   : > { %v2425_v10 = vpop.xlane.xlu0 %790 }
 0x487   : > { %v806_v36 = vand.u32 2147483648, %v2425_v10  ;;  %vm800_vm5 = vweird.f32 %v2425_v10  ;;  %v804_v48 = vand.u32 2147483647, %v2425_v10 }
 0x489   : > { %v2417_v6 = vpop.eup %1817  ;;  %v807_v21 = vor.u32 1.1754944e-38, %v806_v36 }
 0x48a   : > { %v1051_v7 = vsel %vm678_vm3, %v2417_v6, 0.0 }
 0x48b   : > { %1052 = vadd.xlane.f32.xlu0 %v1051_v7 }
 0x48e   : > { %v794_v13 = vpop.xlane.xlu0 %793 }
 0x48f   : > { %1819 = vrcp.f32 %v794_v13  ;;  %v821_v38 = vand.u32 2147483648, %v794_v13  ;;  %vm815_vm0 = vweird.f32 %v794_v13  ;;  %v819_v42 = vand.u32 2147483647, %v794_v13 }
 0x490   : > { %1821 = vrcp.f32 %v2425_v10 }
 0x491   : > { %v822_v50 = vor.u32 1.1754944e-38, %v821_v38  ;;  %vm820_vm11 = vcmp.eq.f32.partialorder %v819_v42, 8.507059e+37  ;;  %v581_v38 = vld [vmem:[%s2367_s29 + $0x4] sm:$0xf] }
 0x495   : > { %v1820_v15 = vpop.eup %1819 }
 0x496   : > { %v1086_v9 = vpop.permute.xlu1 %1085  ;;  %v2430_v17 = vpop.eup %1821  ;;  %v811_v18 = vmul.f32 %v1820_v15, %v794_v13  ;;  %vm816_vm13 = vweird.f32 %v1820_v15 }
 0x497   : > { %1098 = vmatpush.bf16.msra.mxu3 %v1086_v9  ;;  %vm801_vm14 = vweird.f32 %v2430_v17  ;;  %vm2449_vm6 = vmor %vm815_vm0, %vm816_vm13 }
 0x498   : > { %v812_v20 = vsub.f32 1.0, %v811_v18  ;;  %vm2462_vm9 = vmor %vm800_vm5, %vm801_vm14  ;;  %vm805_vm14 = vcmp.eq.f32.partialorder %v804_v48, 8.507059e+37 }
 0x49a   : > { %v813_v28 = vmul.f32 %v1820_v15, %v812_v20 }
 0x49b   : > { %965 = vrot.lane.b32.xlu2 %v2337_v12, %s2125_s28  ;;  %s611_s28 = scalar_lea.vmem %s2719_s7, %s2233_s22 }
 0x49c   : > { %v814_v37 = vadd.f32 %v1820_v15, %v813_v28 }
 0x49e   : > { %v818_v49 = vsel %vm2449_vm6, %v1820_v15, %v814_v37 }
 0x49f   : > { %826 = vrot.lane.b32.xlu0 %v2337_v12, %s2126_s30  ;;  %v796_v12 = vmul.f32 %v2430_v17, %v2425_v10  ;;  %v823_v62 = vsel %vm820_vm11, %v822_v50, %v818_v49 }
 0x4a0   : > { %v824_v13 = vmul.f32 %v2408_v59, %v823_v62 }
 0x4a1   : > { %v797_v24 = vsub.f32 1.0, %v796_v12 }
 0x4a3   : > { %v798_v30 = vmul.f32 %v2430_v17, %v797_v24  ;;  %v960_v24 = vand.u32 2147483648, %v2427_v11 }
 0x4a5   : > { %v799_v41 = vadd.f32 %v2430_v17, %v798_v30 }
 0x4a7   : > { %v803_v58 = vsel %vm2462_vm9, %v2430_v17, %v799_v41  ;;  %vm954_vm9 = vweird.f32 %v2427_v11 }
 0x4a8   : > { %v808_v7 = vsel %vm805_vm14, %v807_v21, %v803_v58 }
 0x4a9   : > { %v809_v12 = vmul.f32 %v2404_v57, %v808_v7  ;;  %v943_v57 = vand.u32 2147483647, %v2421_v8 }
 0x4ab   : > { %vm944_vm11 = vcmp.eq.f32.partialorder %v943_v57, 8.507059e+37 }
 0x4f6   : > { %v1050_v14 = vpop.xlane.xlu2 %1049 }
 0x4f7   : > { %1823 = vrcp.f32 %v1050_v14  ;;  %v1065_v43 = vand.u32 2147483648, %v1050_v14  ;;  %vm1059_vm7 = vweird.f32 %v1050_v14  ;;  %v1063_v45 = vand.u32 2147483647, %v1050_v14 }
 0x4f8   : > { %1825 = vrcp.f32 %v2427_v11 }
 0x4f9   : > { %1827 = vrcp.f32 %v2421_v8  ;;  %v1066_v60 = vor.u32 1.1754944e-38, %v1065_v43  ;;  %vm1064_vm12 = vcmp.eq.f32.partialorder %v1063_v45, 8.507059e+37 }
 0x4fd   : > { %v1824_v19 = vpop.eup %1823 }
 0x4fe   : > { %v1055_v22 = vmul.f32 %v1824_v19, %v1050_v14  ;;  %v1053_v23 = vpop.xlane.xlu0 %1052  ;;  %v2436_v26 = vpop.eup %1825  ;;  %vm1060_vm15 = vweird.f32 %v1824_v19 }
 0x4ff   : > { %1829 = vrcp.f32 %v1053_v23  ;;  %v2438_v27 = vpop.eup %1827  ;;  %v950_v31 = vmul.f32 %v2436_v26, %v2427_v11  ;;  %vm2456_vm8 = vmor %vm1059_vm7, %vm1060_vm15  ;;  %v1080_v53 = vand.u32 2147483648, %v1053_v23  ;;  %v1078_v56 = vand.u32 2147483647, %v1053_v23 }
 0x500   : > { %v1056_v25 = vsub.f32 1.0, %v1055_v22  ;;  %v935_v32 = vmul.f32 %v2438_v27, %v2421_v8  ;;  %vm1074_vm13 = vweird.f32 %v1053_v23  ;;  %vm940_vm5 = vweird.f32 %v2438_v27 }
 0x501   : > { %v1081_v2 = vor.u32 1.1754944e-38, %v1080_v53  ;;  %vm1079_vm0 = vcmp.eq.f32.partialorder %v1078_v56, 8.507059e+37  ;;  %v951_v9 = vsub.f32 1.0, %v950_v31  ;;  %vm955_vm6 = vweird.f32 %v2436_v26 }
 0x502   : > { %v1057_v29 = vmul.f32 %v1824_v19, %v1056_v25  ;;  %v936_v63 = vsub.f32 1.0, %v935_v32  ;;  %vm939_vm7 = vweird.f32 %v2421_v8  ;;  %v958_v25 = vand.u32 2147483647, %v2427_v11  ;;  %v583_v11 = vld [vmem:[%s2367_s29 + $0xc] sm:$0xf] }
 0x503   : > { %v952_v22 = vmul.f32 %v2436_v26, %v951_v9  ;;  %v961_v31 = vor.u32 1.1754944e-38, %v960_v24 }
 0x504   : > { %v1058_v39 = vadd.f32 %v1824_v19, %v1057_v29  ;;  %v937_v17 = vmul.f32 %v2438_v27, %v936_v63 }
 0x505   : > { %v1830_v34 = vpop.eup %1829 }
 0x506   : > { %v1070_v40 = vmul.f32 %v1830_v34, %v1053_v23  ;;  %v1062_v54 = vsel %vm2456_vm8, %v1824_v19, %v1058_v39  ;;  %vm1075_vm10 = vweird.f32 %v1830_v34  ;;  %v966_v19 = vpop.permute.xlu2 %965  ;;  %v825_v23 = vpack.c.bf16 %v824_v13, %v809_v12  ;;  %vm941_vm8 = vmor %vm939_vm7, %vm940_vm5  ;;  %v582_v39 = vld [vmem:[%s2367_s29 + $0x8] sm:$0xf]  ;;  %s591_s29 = scalar_lea.vmem %s2675_s8, %s2323_s12 }
 0x507   : > { %v1067_v0 = vsel %vm1064_vm12, %v1066_v60, %v1062_v54  ;;  %vm1076_vm15 = vmor %vm1074_vm13, %vm1075_vm10  ;;  %v938_v59 = vadd.f32 %v2438_v27, %v937_v17  ;;  %vm959_vm12 = vcmp.eq.f32.partialorder %v958_v25, 8.507059e+37 }
 0x508   : > { %v1071_v47 = vsub.f32 1.0, %v1070_v40  ;;  %v1068_v14 = vmul.f32 %v2413_v1, %v1067_v0  ;;  %v945_v1 = vand.u32 2147483648, %v2421_v8  ;;  %vm956_vm10 = vmor %vm954_vm9, %vm955_vm6  ;;  %v990_v40 = vsel %vm850_vm4, %v582_v39, 0 }
 0x509   : > { %v942_v28 = vsel %vm941_vm8, %v2438_v27, %v938_v59  ;;  %v1110_v27 = vsel %vm850_vm4, %v583_v11, 0 }
 0x50a   : > { %v1072_v55 = vmul.f32 %v1830_v34, %v1071_v47  ;;  %v946_v29 = vor.u32 1.1754944e-38, %v945_v1 }
 0x50c   : > { %v1073_v61 = vadd.f32 %v1830_v34, %v1072_v55  ;;  %v947_v32 = vsel %vm944_vm11, %v946_v29, %v942_v28  ;;  %v1792_v55 = vld [vmem:[%s584_s17] ss:$0 sm:$0xff] }
 0x50d   : > { %v1664_v28 = vld [vmem:[%s591_s29] sm:$0xff] }
 0x50e   : > { %v1077_v3 = vsel %vm1076_vm15, %v1830_v34, %v1073_v61  ;;  %v948_v34 = vmul.f32 %v2398_v52, %v947_v32 }
 0x50f   : > { %v1082_v10 = vsel %vm1079_vm0, %v1081_v2, %v1077_v3 }
 0x510   : > { %v1083_v15 = vmul.f32 %v2417_v6, %v1082_v10  ;;  %v953_v6 = vadd.f32 %v2436_v26, %v952_v22 }
 0x511   : > { %v827_v18 = vpop.permute.xlu0 %826 }
 0x512   : > { %839 = vmatpush.bf16.msrb.mxu2 %v827_v18  ;;  %v1084_v20 = vpack.c.bf16 %v1083_v15, %v1068_v14  ;;  %v957_v30 = vsel %vm956_vm10, %v2436_v26, %v953_v6  ;;  %v852_v26 = vsel %vm850_vm4, %v581_v38, 0  ;;  %v1665_v6 = vld [vmem:[%s591_s29 + $0x8] sm:$0xff]  ;;  %s2019_s29 = scalar_lea.hbm %s2721_s26, 32 }
 0x513   : > { %v962_v8 = vsel %vm959_vm12, %v961_v31, %v957_v30  ;;  %861 = vmatpush.bf16.msrb.mxu0 %v852_v26  ;;  %v1793_v26 = vld [vmem:[%s586_s24] ss:$0 sm:$0xff]  ;;  %s1442_s24 = sshll.u32 %s2318_s10, 4  ;;  %s1443_s24 = int_to_ptr.vmem [resolvable:$true] %s1442_s24 }
 0x514   : > { %1618 = vmatmul.msk.bf16.vlgmr.msra.gmra.mxu3 %vm678_vm3, %v1084_v20  ;;  %v963_v36 = vmul.f32 %v2394_v46, %v962_v8 }
 0x515   : > { %1611 = vmatmul.msk.bf16.vlgmr.msrb.gmra.mxu2 %vm678_vm3, %v825_v23 }
 0x516   : > { %978 = vmatpush.bf16.msra.mxu2 %v966_v19  ;;  %v964_v37 = vpack.c.bf16 %v963_v36, %v948_v34 }
 0x517   : > { %999 = vmatpush.bf16.msra.mxu0 %v990_v40 }
 0x51a   : > { %1119 = vmatpush.bf16.msrb.mxu2 %v1110_v27 }
 0x525   : > { %1615 = vmatmul.msk.bf16.vlgmr.msra.gmra.mxu2 %vm678_vm3, %v964_v37 }
 0x597   : > { %v1100_v41 = vpop.f32.mrf.mxu3 }
 0x598   : > { %v841_v52 = vpop.f32.mrf.mxu2 }
 0x59f   : > { %v1102_v42 = vpop.f32.mrf.mxu3 }
 0x5a0   : > { %v1105_v46 = vpack.c.bf16 %v1102_v42, %v1100_v41  ;;  %v843_v43 = vpop.f32.mrf.mxu2  ;;  %v1794_v41 = vld [vmem:[%s1660_s27 - $0x1] ss:$0 sm:$0xff]  ;;  %s1444_s27 = sshll.u32 %s1441_s20, 4  ;;  %s1445_s27 = int_to_ptr.hbm [resolvable:$true] %s1444_s27 }
 0x5a1   : > { %v846_v44 = vpack.c.bf16 %v843_v43, %v841_v52 }
 0x5a2   : > { %1619 = vmatmul.msk.bf16.vlgmr.msrb.gmra.mxu2 %vm653_vm2, %v1105_v46 }
 0x5a3   : > { %1612 = vmatmul.msk.bf16.vlgmr.msrb.gmra.mxu0 %vm653_vm2, %v846_v44 }
 0x5a4   : > { %1223 = vmatpush.bf16.msrb.mxu0 %v1665_v6 }
 0x5a8   : > { %v980_v45 = vpop.f32.mrf.mxu2  ;;  %1224 = vmatpush.bf16.msrb.mxu0 %v1664_v28 }
 0x5b0   : > { %v982_v47 = vpop.f32.mrf.mxu2 }
 0x5b1   : > { %v985_v48 = vpack.c.bf16 %v982_v47, %v980_v45 }
 0x5b3   : > { %1616 = vmatmul.msk.bf16.vlgmr.msra.gmra.mxu0 %vm653_vm2, %v985_v48 }
 0x620   : > { %v863_v49 = vpop.f32.mrf.mxu0 }
 0x621   : > { %v884_v51 = vadd.f32 %v2388_v33, %v863_v49 }
 0x625   : > { %v1121_v53 = vpop.f32.mrf.mxu2 }
 0x628   : > { %v865_v50 = vpop.f32.mrf.mxu0 }
 0x629   : > { %v886_v21 = vadd.f32 %v2390_v35, %v865_v50  ;;  %v2127_v35 = vmov 32.0  }
 0x62a   : > { %1831 = vrcp.f32 %v2127_v35 }
 0x62d   : > { %v1123_v0 = vpop.f32.mrf.mxu2 }
 0x630   : > { %v1001_v16 = vpop.f32.mrf.mxu0 }
 0x631   : > { %v1006_v54 = vadd.f32 %v1001_v16, %v884_v51 }
 0x633   : > { %v1126_v56 = vadd.f32 %v1121_v53, %v1006_v54  ;;  %v1795_v53 = vld [vmem:[%s596_s14] ss:$0 sm:$0xff] }
 0x635   : > { %v1131_v58 = vadd.f32 %v1792_v55, %v1126_v56 }
 0x637   : > { %v1133_v60 = vadd.f32 %v1131_v58, %v2330_v4  ;;  %v1832_v4 = vpop.eup %1831 }
 0x638   : > { %v1003_v61 = vpop.f32.mrf.mxu0  ;;  %v1142_v9 = vmul.f32 32.0, %v1832_v4  ;;  %vm1146_vm2 = vweird.f32 %v1832_v4 }
 0x639   : > { %v1007_v62 = vadd.f32 %v1003_v61, %v886_v21  ;;  %v1135_v63 = vsel %vm631_vm1, %v1133_v60, 0.0 }
 0x63a   : > { %1136 = vadd.xlane.f32.xlu0 %v1135_v63  ;;  %v1143_v10 = vsub.f32 1.0, %v1142_v9 }
 0x63b   : > { %v1127_v2 = vadd.f32 %v1123_v0, %v1007_v62 }
 0x63c   : > { %v1144_v13 = vmul.f32 %v1832_v4, %v1143_v10 }
 0x63d   : > { %v1132_v33 = vadd.f32 %v1792_v55, %v1127_v2 }
 0x63e   : > { %v1145_v14 = vadd.f32 %v1832_v4, %v1144_v13  ;;  %v1669_v13 = vld [vmem:[%s2579_s1 + $0x10] sm:$0xff] }
 0x63f   : > { %v1134_v3 = vadd.f32 %v1132_v33, %v2332_v5 }
 0x640   : > { %v2518_v15 = vsel %vm1146_vm2, %v1832_v4, %v1145_v14 }
 0x641   : > { %v1138_v7 = vsel %vm631_vm1, %v1134_v3, 0.0 }
 0x642   : > { %1139 = vadd.xlane.f32.xlu1 %v1138_v7  ;;  %v1670_v7 = vld [vmem:[%s2579_s1 + $0x18] sm:$0xff] }
 0x643   : > { %1347 = vmatpush.bf16.msrb.mxu1 %v1670_v7 }
 0x647   : > { %1348 = vmatpush.bf16.msrb.mxu1 %v1669_v13 }
 0x6ad   : > { %v1137_v17 = vpop.xlane.xlu0 %1136 }
 0x6ae   : > { %v1148_v18 = vmul.f32 %v2518_v15, %v1137_v17 }
 0x6b0   : > { %v1150_v12 = vsub.f32 %v1133_v60, %v1148_v18 }
 0x6b2   : > { %v1152_v5 = vmul.f32 %v1150_v12, %v1150_v12 }
 0x6b4   : > { %v1154_v19 = vsel %vm631_vm1, %v1152_v5, 0.0 }
 0x6b5   : > { %1155 = vadd.xlane.f32.xlu2 %v1154_v19  ;;  %v1140_v20 = vpop.xlane.xlu1 %1139 }
 0x6b6   : > { %v1149_v22 = vmul.f32 %v2518_v15, %v1140_v20  ;;  %v1668_v20 = vld [vmem:[%s2579_s1 + $0x8] sm:$0xff] }
 0x6b7   : > { %1349 = vmatpush.bf16.msrb.mxu1 %v1668_v20 }
 0x6b8   : > { %v1151_v23 = vsub.f32 %v1134_v3, %v1149_v22 }
 0x6ba   : > { %v1153_v59 = vmul.f32 %v1151_v23, %v1151_v23 }
 0x6bc   : > { %v1157_v1 = vsel %vm631_vm1, %v1153_v59, 0.0 }
 0x6bd   : > { %1158 = vadd.xlane.f32.xlu0 %v1157_v1 }
 0x728   : > { %v1156_v57 = vpop.xlane.xlu2 %1155 }
 0x729   : > { %v1160_v24 = vmul.f32 %v1156_v57, %v2518_v15 }
 0x72b   : > { %v1162_v25 = vadd.f32 1e-06, %v1160_v24 }
 0x72d   : > { %1833 = vrsqrt.f32 %v1162_v25  ;;  %vm1170_vm4 = vweird.f32 %v1162_v25 }
 0x730   : > { %v1159_v29 = vpop.xlane.xlu0 %1158 }
 0x731   : > { %v1161_v30 = vmul.f32 %v1159_v29, %v2518_v15 }
 0x733   : > { %v1834_v31 = vpop.eup %1833  ;;  %v1163_v32 = vadd.f32 1e-06, %v1161_v30 }
 0x734   : > { %v1165_v8 = vmul.f32 %v1834_v31, %v1162_v25  ;;  %vm1171_vm3 = vweird.f32 %v1834_v31  ;;  %v1667_v25 = vld [vmem:[%s2579_s1] sm:$0xff]  ;;  %s2013_s1 = sshra.s32 %s1445_s27, 4  ;;  %s2014_s1 = int_to_ptr.hbm [resolvable:$true] %s2013_s1 }
 0x735   : > { %1835 = vrsqrt.f32 %v1163_v32  ;;  %vm1172_vm13 = vmor %vm1170_vm4, %vm1171_vm3  ;;  %vm1180_vm15 = vweird.f32 %v1163_v32  ;;  %1350 = vmatpush.bf16.msrb.mxu1 %v1667_v25  ;;  %vm1339_vm4 = vcmask 523264   ;;  %s2015_s14 = scalar_lea.hbm %s2014_s1, 16  ;;  %p2020_p4 = scmp.lt.s32.totalorder %s2014_s1, %s2721_s26 }
 0x736   : > { %v1166_v34 = vmul.f32 %v1834_v31, %v1165_v8  ;;  %p2016_p0 = scmp.ne.s32.totalorder %s2014_s1, %s2015_s14  ;;  %p2021_p7 = scmp.lt.s32.totalorder %s2019_s29, %s2015_s14 }
 0x738   : > { %v1167_v36 = vmul.f32 0.5, %v1166_v34  ;;  %p2017_p1 = pnand %p2016_p0, %p2252_p5  ;;  %p2022_p8 = por %p2021_p7, %p2020_p4 }
 0x73a   : > { %v1168_v37 = vsub.f32 1.5, %v1167_v36  ;;  %p2018_p3 = pneg %p2017_p1 }
 0x73b   : > { %v1836_v11 = vpop.eup %1835 }
 0x73c   : > { %v1169_v27 = vmul.f32 %v1834_v31, %v1168_v37  ;;  %v1175_v38 = vmul.f32 %v1836_v11, %v1163_v32  ;;  %vm1181_vm14 = vweird.f32 %v1836_v11  ;;  %p2023_p9 = pnand %p2022_p8, %p2018_p3 }
 0x73d   : > { %vm1182_vm0 = vmor %vm1180_vm15, %vm1181_vm14 }
 0x73e   : > { %v1173_v39 = vsel %vm1172_vm13, %v1834_v31, %v1169_v27  ;;  %v1176_v40 = vmul.f32 %v1836_v11, %v1175_v38 }
 0x73f   : > { %v1184_v52 = vmul.f32 %v1173_v39, %v1150_v12 }
 0x740   : > { %v1177_v42 = vmul.f32 0.5, %v1176_v40 }
 0x741   : > { %v1189_v46 = vmul.f32 %v1793_v26, %v1184_v52 }
 0x742   : > { %v1178_v43 = vsub.f32 1.5, %v1177_v42 }
 0x743   : > { %v2541_v44 = vadd.f32 %v1794_v41, %v1189_v46 }
 0x744   : > { %v1179_v45 = vmul.f32 %v1836_v11, %v1178_v43 }
 0x745   : > { %1196 = vst.msk [vmem:[%s2318_s10] sm:$0xff] %vm631_vm1, %v2541_v44 }
 0x746   : > { %v1183_v47 = vsel %vm1182_vm0, %v1836_v11, %v1179_v45 }
 0x747   : > { %v1185_v48 = vmul.f32 %v1183_v47, %v1151_v23 }
 0x749   : > { %v1190_v49 = vmul.f32 %v1793_v26, %v1185_v48 }
 0x74b   : > { %v2546_v50 = vadd.f32 %v1794_v41, %v1190_v49 }
 0x74d   : > { %1197 = vst.msk [vmem:[%s2318_s10 + $0x8] sm:$0xff] %vm631_vm1, %v2546_v50  ;;  %v1198_v51 = vpack.c.bf16 %v2546_v50, %v2541_v44 }
 0x74f   : > { %1628 = vmatmul.msk.bf16.vlgmr.msrb.gmra.mxu0 %vm631_vm1, %v1198_v51 }
 0x7cc   : > { %v1226_v16 = vpop.f32.mrf.mxu0 }
 0x7cd   : > { %v2563_v54 = vadd.f32 %v1795_v53, %v1226_v16 }
 0x7cf   : > { %v2566_v55 = vmul.f32 0.70710677, %v2563_v54 }
 0x7d1   : > { %v1239_v56 = vand.u32 2147483647, %v2566_v55  ;;  %vm1235_vm2 = vcmp.ge.f32.partialorder %v2566_v55, 0.0 }
 0x7d3   : > { %v1241_v58 = vmul.f32 0.3275911, %v1239_v56  ;;  %v1293_v23 = vsub.f32 0.0, %v1239_v56 }
 0x7d4   : > { %v1228_v21 = vpop.f32.mrf.mxu0 }
 0x7d5   : > { %v1243_v60 = vadd.f32 1.0, %v1241_v58  ;;  %v2569_v61 = vadd.f32 %v1795_v53, %v1228_v21  ;;  %v1295_v29 = vmul.f32 %v1293_v23, %v1239_v56  ;;  %v2128_v21 = vmov -1.0  }
 0x7d7   : > { %1837 = vrcp.f32 %v1243_v60  ;;  %v2572_v62 = vmul.f32 0.70710677, %v2569_v61  ;;  %v1256_v4 = vand.u32 2147483648, %v1243_v60  ;;  %v1254_v10 = vand.u32 2147483647, %v1243_v60 }
 0x7d8   : > { %vm1250_vm6 = vweird.f32 %v1243_v60  ;;  %v1297_v36 = vmul.f32 1.442695, %v1295_v29  ;;  %v1232_v55 = vmul.f32 0.5, %v2569_v61 }
 0x7d9   : > { %v1240_v63 = vand.u32 2147483647, %v2572_v62  ;;  %v1257_v17 = vor.u32 1.1754944e-38, %v1256_v4  ;;  %vm1255_vm8 = vcmp.eq.f32.partialorder %v1254_v10, 8.507059e+37  ;;  %vm1236_vm3 = vcmp.ge.f32.partialorder %v2572_v62, 0.0 }
 0x7da   : > { %v1796_v62 = vld [vmem:[%s609_s16] ss:$0 sm:$0xff] }
 0x7db   : > { %v1242_v0 = vmul.f32 0.3275911, %v1240_v63  ;;  %v1294_v11 = vsub.f32 0.0, %v1240_v63 }
 0x7dd   : > { %v1838_v2 = vpop.eup %1837  ;;  %v1244_v3 = vadd.f32 1.0, %v1242_v0  ;;  %v1296_v40 = vmul.f32 %v1294_v11, %v1240_v63 }
 0x7de   : > { %v1246_v33 = vmul.f32 %v1838_v2, %v1243_v60  ;;  %vm1251_vm5 = vweird.f32 %v1838_v2  ;;  %v1237_v60 = vsel %vm1235_vm2, 1.0, %v2128_v21 }
 0x7df   : > { %1839 = vrcp.f32 %v1244_v3  ;;  %vm1252_vm7 = vmor %vm1250_vm6, %vm1251_vm5  ;;  %v1271_v6 = vand.u32 2147483648, %v1244_v3  ;;  %v1269_v24 = vand.u32 2147483647, %v1244_v3  ;;  %vm1265_vm10 = vweird.f32 %v1244_v3 }
 0x7e0   : > { %v1247_v35 = vsub.f32 1.0, %v1246_v33  ;;  %1841 = vpow2.f32 %v1297_v36  ;;  %v1299_v43 = vmul.f32 1.442695, %v1296_v40  ;;  %v1238_v33 = vsel %vm1236_vm3, 1.0, %v2128_v21 }
 0x7e1   : > { %v1272_v32 = vor.u32 1.1754944e-38, %v1271_v6  ;;  %vm1270_vm12 = vcmp.eq.f32.partialorder %v1269_v24, 8.507059e+37 }
 0x7e2   : > { %v1248_v9 = vmul.f32 %v1838_v2, %v1247_v35  ;;  %1843 = vpow2.f32 %v1299_v43  ;;  %v1231_v35 = vmul.f32 0.5, %v2563_v54 }
 0x7e4   : > { %v1249_v14 = vadd.f32 %v1838_v2, %v1248_v9 }
 0x7e5   : > { %v1840_v18 = vpop.eup %1839 }
 0x7e6   : > { %v1253_v12 = vsel %vm1252_vm7, %v1838_v2, %v1249_v14  ;;  %v1261_v19 = vmul.f32 %v1840_v18, %v1244_v3  ;;  %vm1266_vm9 = vweird.f32 %v1840_v18  ;;  %v1842_v47 = vpop.eup %1841 }
 0x7e7   : > { %v1258_v5 = vsel %vm1255_vm8, %v1257_v17, %v1253_v12  ;;  %vm1267_vm11 = vmor %vm1265_vm10, %vm1266_vm9 }
 0x7e8   : > { %v1275_v22 = vmul.f32 1.0614054, %v1258_v5  ;;  %v1262_v59 = vsub.f32 1.0, %v1261_v19  ;;  %v1844_v58 = vpop.eup %1843 }
 0x7ea   : > { %v1277_v1 = vadd.f32 -1.4531521, %v1275_v22  ;;  %v1263_v57 = vmul.f32 %v1840_v18, %v1262_v59 }
 0x7ec   : > { %v1279_v28 = vmul.f32 %v1277_v1, %v1258_v5  ;;  %v1264_v30 = vadd.f32 %v1840_v18, %v1263_v57 }
 0x7ee   : > { %v1281_v31 = vadd.f32 1.4214138, %v1279_v28  ;;  %v1268_v8 = vsel %vm1267_vm11, %v1840_v18, %v1264_v30 }
 0x7ef   : > { %v1273_v37 = vsel %vm1270_vm12, %v1272_v32, %v1268_v8 }
 0x7f0   : > { %v1283_v34 = vmul.f32 %v1281_v31, %v1258_v5  ;;  %v1276_v27 = vmul.f32 1.0614054, %v1273_v37 }
 0x7f2   : > { %v1285_v38 = vadd.f32 -0.28449672, %v1283_v34  ;;  %v1278_v26 = vadd.f32 -1.4531521, %v1276_v27 }
 0x7f4   : > { %v1287_v39 = vmul.f32 %v1285_v38, %v1258_v5  ;;  %v1280_v41 = vmul.f32 %v1278_v26, %v1273_v37 }
 0x7f6   : > { %v1289_v52 = vadd.f32 0.2548296, %v1287_v39  ;;  %v1282_v42 = vadd.f32 1.4214138, %v1280_v41 }
 0x7f8   : > { %v1291_v46 = vmul.f32 %v1289_v52, %v1258_v5  ;;  %v1284_v45 = vmul.f32 %v1282_v42, %v1273_v37 }
 0x7fa   : > { %v1301_v48 = vmul.f32 %v1842_v47, %v1291_v46  ;;  %v1286_v49 = vadd.f32 -0.28449672, %v1284_v45 }
 0x7fc   : > { %v1288_v51 = vmul.f32 %v1286_v49, %v1273_v37  ;;  %v1303_v53 = vsub.f32 1.0, %v1301_v48 }
 0x7fe   : > { %v1290_v16 = vadd.f32 0.2548296, %v1288_v51  ;;  %v1305_v63 = vmul.f32 %v1303_v53, %v1237_v60 }
 0x800   : > { %v1292_v56 = vmul.f32 %v1290_v16, %v1273_v37  ;;  %v1307_v3 = vadd.f32 1.0, %v1305_v63 }
 0x802   : > { %v1302_v0 = vmul.f32 %v1844_v58, %v1292_v56  ;;  %v1309_v9 = vmul.f32 %v1307_v3, %v1231_v35 }
 0x804   : > { %v1304_v2 = vsub.f32 1.0, %v1302_v0 }
 0x806   : > { %v1306_v7 = vmul.f32 %v1304_v2, %v1238_v33 }
 0x808   : > { %v1308_v4 = vadd.f32 1.0, %v1306_v7 }
 0x80a   : > { %v1310_v10 = vmul.f32 %v1308_v4, %v1232_v55 }
 0x80c   : > { %v1311_v13 = vpack.c.bf16 %v1310_v10, %v1309_v9 }
 0x80e   : > { %1645 = vmatmul.msk.bf16.vlgmr.msrb.gmra.mxu1 %vm1339_vm4, %v1311_v13 }
 0x88b   : > { %v1352_v14 = vpop.f32.mrf.mxu1 }
 0x88c   : > { %v1353_v17 = vadd.f32 %v1796_v62, %v1352_v14 }
 0x88e   : > { %v1357_v18 = vadd.f32 %v1353_v17, %v2541_v44 }
 0x890   : > { %v1359_v54 = vsel %vm631_vm1, %v1357_v18, 0.0 }
 0x891   : > { %1360 = vadd.xlane.f32.xlu1 %v1359_v54 }
 0x893   : > { %v1354_v12 = vpop.f32.mrf.mxu1 }
 0x894   : > { %v1355_v61 = vadd.f32 %v1796_v62, %v1354_v12 }
 0x896   : > { %v1358_v5 = vadd.f32 %v1355_v61, %v2546_v50 }
 0x898   : > { %v1362_v19 = vsel %vm631_vm1, %v1358_v5, 0.0 }
 0x899   : > { %1363 = vadd.xlane.f32.xlu0 %v1362_v19 }
 0x904   : > { %v1361_v20 = vpop.xlane.xlu1 %1360 }
 0x905   : > { %v1365_v44 = vmul.f32 %v1361_v20, %v2518_v15 }
 0x907   : > { %v1367_v22 = vsub.f32 %v1357_v18, %v1365_v44 }
 0x909   : > { %v1369_v23 = vmul.f32 %v1367_v22, %v1367_v22 }
 0x90b   : > { %v1371_v59 = vsel %vm631_vm1, %v1369_v23, 0.0 }
 0x90c   : > { %v1364_v1 = vpop.xlane.xlu0 %1363  ;;  %1372 = vadd.xlane.f32.xlu2 %v1371_v59 }
 0x90d   : > { %v1366_v6 = vmul.f32 %v1364_v1, %v2518_v15 }
 0x90f   : > { %v1368_v57 = vsub.f32 %v1358_v5, %v1366_v6 }
 0x911   : > { %v1370_v50 = vmul.f32 %v1368_v57, %v1368_v57 }
 0x913   : > { %v1374_v24 = vsel %vm631_vm1, %v1370_v50, 0.0 }
 0x914   : > { %1375 = vadd.xlane.f32.xlu1 %v1374_v24 }
 0x915   : > { %2026 = shalt.err (!%p2023_p9)
}
 0x916   : > { %s2129_s0 = smov 128   ;;  %s2130_s10 = smov 8   ;;  %v1797_v39 = vld [vmem:[%s611_s28] ss:$0 sm:$0xff] }
 0x917   : > { %1697 = dma.vmem_to_hbm [thread:$0]  (%p2252_p5), %s1443_s24, 256, %s1445_s27, %s1416_s23, %s2129_s0, %s2129_s0, %s2130_s10  }
 0x918   : > { %s2722_s25 = scalar_lea.vmem [#allocation10], %s2105_s21  ;;  %s2131_s28 = smov [#allocation11]  }
 0x919   : > { %v1798_v52 = vld [vmem:[%s2722_s25 - $0x1] ss:$0 sm:$0xff]  ;;  %s1425_s17 = sshll.u32 %s2131_s28, 4  ;;  %s2723_s27 = sld [smem:[#allocation30_spill]]  ;;  %s1426_s17 = int_to_ptr.vmem [resolvable:$true] %s1425_s17 }
 0x91f   : > { %s1427_s23 = sshll.u32 %s2723_s27, 4  ;;  %s1428_s23 = int_to_ptr.hbm [resolvable:$true] %s1427_s23 }
 0x97f   : > { %v1373_v25 = vpop.xlane.xlu2 %1372 }
 0x980   : > { %v1377_v28 = vmul.f32 %v1373_v25, %v2518_v15 }
 0x982   : > { %v1379_v29 = vadd.f32 1e-06, %v1377_v28 }
 0x984   : > { %1845 = vrsqrt.f32 %v1379_v29  ;;  %vm1387_vm14 = vweird.f32 %v1379_v29 }
 0x987   : > { %v1376_v30 = vpop.xlane.xlu1 %1375 }
 0x988   : > { %v1378_v31 = vmul.f32 %v1376_v30, %v2518_v15 }
 0x98a   : > { %v1846_v32 = vpop.eup %1845  ;;  %v1380_v8 = vadd.f32 1e-06, %v1378_v31 }
 0x98b   : > { %v1382_v34 = vmul.f32 %v1846_v32, %v1379_v29  ;;  %vm1388_vm13 = vweird.f32 %v1846_v32 }
 0x98c   : > { %1847 = vrsqrt.f32 %v1380_v8  ;;  %vm1389_vm15 = vmor %vm1387_vm14, %vm1388_vm13  ;;  %vm1397_vm5 = vweird.f32 %v1380_v8 }
 0x98d   : > { %v1383_v36 = vmul.f32 %v1846_v32, %v1382_v34 }
 0x98f   : > { %v1384_v37 = vmul.f32 0.5, %v1383_v36 }
 0x991   : > { %v1385_v11 = vsub.f32 1.5, %v1384_v37 }
 0x992   : > { %v1848_v27 = vpop.eup %1847 }
 0x993   : > { %v1386_v38 = vmul.f32 %v1846_v32, %v1385_v11  ;;  %v1392_v26 = vmul.f32 %v1848_v27, %v1380_v8  ;;  %vm1398_vm0 = vweird.f32 %v1848_v27 }
 0x994   : > { %vm1399_vm6 = vmor %vm1397_vm5, %vm1398_vm0 }
 0x995   : > { %v1390_v15 = vsel %vm1389_vm15, %v1846_v32, %v1386_v38  ;;  %v1393_v40 = vmul.f32 %v1848_v27, %v1392_v26 }
 0x996   : > { %v1401_v41 = vmul.f32 %v1390_v15, %v1367_v22 }
 0x997   : > { %v1394_v42 = vmul.f32 0.5, %v1393_v40 }
 0x998   : > { %v1406_v46 = vmul.f32 %v1797_v39, %v1401_v41 }
 0x999   : > { %v1395_v43 = vsub.f32 1.5, %v1394_v42 }
 0x99a   : > { %v1411_v45 = vadd.f32 %v1798_v52, %v1406_v46 }
 0x99b   : > { %v1396_v47 = vmul.f32 %v1848_v27, %v1395_v43 }
 0x99c   : > { %1413 = vst.msk [vmem:[#allocation11] sm:$0xff] %vm631_vm1, %v1411_v45 }
 0x99d   : > { %v1400_v48 = vsel %vm1399_vm6, %v1848_v27, %v1396_v47 }
 0x99e   : > { %v1402_v49 = vmul.f32 %v1400_v48, %v1368_v57 }
 0x9a0   : > { %v1407_v51 = vmul.f32 %v1797_v39, %v1402_v49 }
 0x9a2   : > { %v1412_v53 = vadd.f32 %v1798_v52, %v1407_v51 }
 0x9a4   : > { %1414 = vst.msk [vmem:[#allocation11 + $0x8] sm:$0xff] %vm631_vm1, %v1412_v53 }
 0x9a5   : > { %1696 = dma.vmem_to_hbm [thread:$0]  (%p366_p2), %s1426_s17, 256, %s1428_s23, [#allocation4], %s2129_s0, %s2129_s0, %s2130_s10  }
 0x9a6   : > { %2084 = dma.done.wait (%p366_p2), [#allocation4], 256  }
 0x9a7   : > { %2086 = vsyncadd (%p366_p2), [#allocation4], 4294967040 }
 0x9a8 PF: > { %s2724_s1 = sld [smem:[#allocation19_spill]]  ;;  %p1733_p5 = scmp.ge.s32.totalorder %s2105_s21, 2 }
 0x9aa   : > { %p1718_p10 = pnand %p1733_p5, %p2256_p6 }
 0x9ac   : > { %p1719_p11 = pneg %p1718_p10 }
 0x9ae   : > { %s1464_s15 = sand.u32 1, %s2724_s1  }
 0x9af   : > { %s1465_s18 = scalar_lea.sflag [#allocation13], %s1464_s15 }
 0x9b0   : > { %2088 = dma.done.wait (%p1719_p11), %s1465_s18, 256  }
 0x9b1   : > { %2090 = vsyncadd (%p1719_p11), %s1465_s18, 4294967040  ;;  %s2726_s21 = sld [smem:[#allocation21_spill]]  ;;  %s2729_s18 = smov %s2097_s19 }
 0x9b2   : > { %s2727_s29 = sld [smem:[#allocation20_spill]] }
 0x9b3   : > { %s2728_s20 = sld [smem:[#allocation22_spill]] }
 0x9b7   : > { %p30_p12 = scmp.ge.s32.totalorder %s2726_s21, 4  }
 0x9b8   : > { %s2730_s19 = smov %s2727_s29 }
 0x9b9   :  { %32 = sbr.rel (!%p30_p12) target bundleno = 15 (0xf), region = 154 }
 0x9be   :  { %1471 = vsyncpa [#allocation3], 1 }
 0x9bf   :  { %1473 = vsyncpa [#allocation3 + $0x1], 1 }
 0x9c0   :  { %1474 = vsyncpa [#allocation6], 1 }
 0x9c1   :  { %1475 = vsyncpa [#allocation9], 1 }
 0x9c2   :  { %1476 = vsyncpa [#allocation4], 1 }
 0x9c3   :  { %1478 = vsyncpa [#allocation4 + $0x1], 1 }
 0x9c4   :  { %1479 = vsyncpa [#allocation13], 1 }
 0x9c5   :  { %1481 = vsyncpa [#allocation13 + $0x1], 1 }

</bundles_post_ra>
